<compile_context>
chip_gen: v7x
topology: tpu7x:2x2x1
jax: 0.10.0
libtpu: 0.0.40
codegen_flags: <defaults>
</compile_context>

<pallas_src>
import functools
import math

import numpy as np
import jax
import jax.numpy as jnp
from jax import lax
from jax.experimental import pallas as pl
from jax.experimental.pallas import tpu as pltpu

BN_EPS = 1e-5
LANE = 128   # TPU lane width: GEMM-N / output channels padded to this


# ------------------------------ in-kernel helpers ----------------------------

def _bn_train(h, gamma, beta):
    # Training-mode BatchNorm over rows (rows = N*H*W), biased variance, eps=1e-5.
    # One-pass statistics (sum + sum-of-squares).  Only valid because the whole
    # M axis is one VMEM-resident block.
    inv_m = 1.0 / h.shape[0]
    mean = jnp.sum(h, axis=0, keepdims=True) * inv_m
    ex2 = jnp.sum(h * h, axis=0, keepdims=True) * inv_m
    var = ex2 - mean * mean
    return (h - mean) * (gamma * lax.rsqrt(var + BN_EPS)) + beta


# ------------------------------ Pallas kernels -------------------------------

def _conv_bn_relu_kernel(a_ref, w_ref, g_ref, b_ref, o_ref):
    # o = ReLU(BN(A @ W)).  Conv bias omitted: cancelled by training-mode BN.
    h = jnp.dot(a_ref[...], w_ref[...], preferred_element_type=jnp.float32)
    o_ref[...] = jnp.maximum(_bn_train(h, g_ref[...], b_ref[...]), 0.0)


def _conv2_res_kernel(a_ref, w2_ref, g2_ref, b2_ref, shift_ref,
                      wa1_ref, ga1_ref, ba1_ref, wb1_ref, gb1_ref, bb1_ref,
                      wa2_ref, ga2_ref, ba2_ref, wb2_ref, gb2_ref, bb2_ref,
                      o_ref, *, zdim):
    # Fused: conv2-GEMM + BN, then two ResBlocks, all VMEM-resident.
    #   x   = BN(A2 @ W2)                                    (M, 128)
    #   x   = x + BN(Conv1x1(ReLU(BN(Conv3x3(ReLU(x))))))    (applied twice)
    # Conv3x3 (stride 1, pad 1) = 9 tap matmuls; the spatial shift + zero-pad
    # of tap t is the pre-built 0/1 matrix shift_ref[t] (M, M), applied on MXU.
    x = _bn_train(jnp.dot(a_ref[...], w2_ref[...], preferred_element_type=jnp.float32),
                  g2_ref[...], b2_ref[...])

    def res_block(x, wa_ref, ga_ref, ba_ref, wb_ref, gb_ref, bb_ref):
        z = jnp.maximum(x[:, :zdim], 0.0)        # leading ReLU once, real channels only
        acc = jnp.zeros(x.shape, jnp.float32)
        for t in range(9):                       # statically unrolled tap loop
            u = jnp.dot(z, wa_ref[t], preferred_element_type=jnp.float32)          # (M, 128)
            acc = acc + jnp.dot(shift_ref[t], u, preferred_element_type=jnp.float32)
        h = jnp.maximum(_bn_train(acc, ga_ref[...], ba_ref[...]), 0.0)
        h = jnp.dot(h[:, :zdim], wb_ref[...], preferred_element_type=jnp.float32)   # 1x1 conv
        return x + _bn_train(h, gb_ref[...], bb_ref[...])

    x = res_block(x, wa1_ref, ga1_ref, ba1_ref, wb1_ref, gb1_ref, bb1_ref)
    x = res_block(x, wa2_ref, ga2_ref, ba2_ref, wb2_ref, gb2_ref, bb2_ref)
    o_ref[...] = x


# ------------------------------ pallas_call wrappers -------------------------

def _whole_block_call(kernel, inputs, out_shape, flops):
    # Whole problem fits in VMEM: no grid, each operand is a single full block.
    bytes_accessed = 4 * (sum(int(v.size) for v in inputs) + math.prod(out_shape))
    return pl.pallas_call(
        kernel,
        out_shape=jax.ShapeDtypeStruct(out_shape, jnp.float32),
        in_specs=[pl.BlockSpec(memory_space=pltpu.MemorySpace.VMEM) for _ in inputs],
        out_specs=pl.BlockSpec(memory_space=pltpu.MemorySpace.VMEM),
        cost_estimate=pl.CostEstimate(flops=int(flops), transcendentals=0,
                                      bytes_accessed=int(bytes_accessed)),
    )(*inputs)


def conv_bn_relu(a, w, g, b):
    M, K = a.shape
    N = w.shape[1]
    return _whole_block_call(_conv_bn_relu_kernel, [a, w, g, b], (M, N), 2 * M * K * N)


def conv2_resblocks(a, w2, g2, b2, shift, res1, res2, *, zdim):
    M, K = a.shape
    flops = 2 * M * K * LANE                                            # conv2 GEMM
    flops += 2 * (9 * (2 * M * zdim * LANE + 2 * M * M * LANE)          # 3x3 taps (x2 blocks)
                  + 2 * M * zdim * LANE)                                # 1x1 conv
    inputs = [a, w2, g2, b2, shift,
              res1['wA'], res1['gA'], res1['beA'], res1['wB'], res1['gB'], res1['beB'],
              res2['wA'], res2['gA'], res2['beA'], res2['wB'], res2['gB'], res2['beB']]
    return _whole_block_call(functools.partial(_conv2_res_kernel, zdim=zdim),
                             inputs, (M, LANE), flops)


# ------------------------------ XLA glue (layout plumbing) -------------------

def im2col(x_nhwc, kh, kw, stride, pad):
    N, H, W, C = x_nhwc.shape
    OH = (H + 2 * pad - kh) // stride + 1
    OW = (W + 2 * pad - kw) // stride + 1
    xp = jnp.pad(x_nhwc, ((0, 0), (pad, pad), (pad, pad), (0, 0)))
    cols = [xp[:, i:i + stride * (OH - 1) + 1:stride,
               j:j + stride * (OW - 1) + 1:stride, :]
            for i in range(kh) for j in range(kw)]
    patches = jnp.concatenate(cols, axis=-1)            # (N, OH, OW, kh*kw*C)
    return patches.reshape(N * OH * OW, kh * kw * C), (N, OH, OW)


# ------------------------------ weight packing (outside jit) -----------------

def _pack_conv_gemm(w_oihw):
    # (cout, cin, kh, kw) -> (kh*kw*cin, 128); real K, lane-padded N.
    cout, cin, kh, kw = w_oihw.shape
    w = jnp.transpose(w_oihw, (2, 3, 1, 0)).reshape(kh * kw * cin, cout)
    return jnp.pad(w, ((0, 0), (0, LANE - cout)))


def _pack_conv3x3_taps(w_oihw):
    # (cout, cin, 3, 3) -> (9, cin, 128); tap t = a*3 + b.
    cout, cin, kh, kw = w_oihw.shape
    w = jnp.transpose(w_oihw, (2, 3, 1, 0)).reshape(kh * kw, cin, cout)
    return jnp.pad(w, ((0, 0), (0, 0), (0, LANE - cout)))


def _pack_conv1x1(w_oihw):
    cout, cin, _, _ = w_oihw.shape
    wm = jnp.transpose(w_oihw[:, :, 0, 0], (1, 0))
    return jnp.pad(wm, ((0, 0), (0, LANE - cout)))


def _pad_lanes(v):
    return jnp.pad(v, ((0, 0), (0, LANE - v.shape[-1])))


def _make_shift_mats(n, h, w):
    # shift[t, r_out, r_in] = 1 iff output pixel r_out takes tap t from input r_in
    # (3x3 conv, stride 1, pad 1); boundary zero-padding is rows of all zeros.
    m = n * h * w
    mats = np.zeros((9, m, m), np.float32)
    for a in range(3):
        for b in range(3):
            t = a * 3 + b
            dy, dx = a - 1, b - 1
            for nn in range(n):
                for i in range(h):
                    for j in range(w):
                        ii, jj = i + dy, j + dx
                        if 0 <= ii < h and 0 <= jj < w:
                            mats[t, nn * h * w + i * w + j, nn * h * w + ii * w + jj] = 1.0
    return jnp.asarray(mats)


def pack_params(p, batch, in_hw):
    # Called once, OUTSIDE the jitted forward.
    h_final = in_hw // 4                                  # two stride-2 convs
    packed = {
        'w1': _pack_conv_gemm(p['w1']),                   # (64, 128)
        'g1': _pad_lanes(p['g1']), 'be1': _pad_lanes(p['be1']),
        'w2': _pack_conv_gemm(p['w2']),                   # (512, 128)
        'g2': _pad_lanes(p['g2']), 'be2': _pad_lanes(p['be2']),
        'shift': _make_shift_mats(batch, h_final, h_final),  # (9, 32, 32)
    }
    for name in ('res1', 'res2'):
        pr = p[name]
        packed[name] = {
            'wA': _pack_conv3x3_taps(pr['wA']),           # (9, zdim, 128)
            'gA': _pad_lanes(pr['gA']), 'beA': _pad_lanes(pr['beA']),
            'wB': _pack_conv1x1(pr['wB']),                # (zdim, 128)
            'gB': _pad_lanes(pr['gB']), 'beB': _pad_lanes(pr['beB']),
        }
    return packed


# ------------------------------ forward --------------------------------------

def oord_encoder_forward(x_nchw, pk, *, hidden, zdim):
    x = jnp.transpose(x_nchw, (0, 2, 3, 1)).astype(jnp.float32)     # -> NHWC

    # Layer 1: Conv(n_chan->hidden, 4, 2, 1) + BN + ReLU    (pallas_call #1)
    a1, (N, OH, OW) = im2col(x, 4, 4, 2, 1)                          # (128, 64)
    y1 = conv_bn_relu(a1, pk['w1'], pk['g1'], pk['be1'])             # (128, 128)
    y1 = y1[:, :hidden].reshape(N, OH, OW, hidden)                   # real channels (K stays 512, not 2048)

    # Layers 2-4: Conv(hidden->zdim,4,2,1)+BN, ResBlock, ResBlock   (pallas_call #2, fully fused)
    a2, (N, OH, OW) = im2col(y1, 4, 4, 2, 1)                         # (32, 512)
    y = conv2_resblocks(a2, pk['w2'], pk['g2'], pk['be2'], pk['shift'],
                        pk['res1'], pk['res2'], zdim=zdim)           # (32, 128)

    y = y[:, :zdim].reshape(N, OH, OW, zdim)                         # drop lane padding
    return jnp.transpose(y, (0, 3, 1, 2))                            # back to NCHW


# ------------------------------ parameter init -------------------------------

def init_params(key, n_chan, hidden, zdim):
    ks = iter(jax.random.split(key, 16))

    def conv(cout, cin, kh, kw):
        w = jax.random.normal(next(ks), (cout, cin, kh, kw), jnp.float32) * 0.1
        b = jax.random.normal(next(ks), (cout,), jnp.float32) * 0.05
        return w, b

    def bn(c):
        return jnp.ones((1, c), jnp.float32), jnp.zeros((1, c), jnp.float32)

    w1, b1 = conv(hidden, n_chan, 4, 4)
    g1, be1 = bn(hidden)
    w2, b2 = conv(zdim, hidden, 4, 4)
    g2, be2 = bn(zdim)

    def res():
        wA, bA = conv(zdim, zdim, 3, 3)
        gA, beA = bn(zdim)
        wB, bB = conv(zdim, zdim, 1, 1)
        gB, beB = bn(zdim)
        return dict(wA=wA, bA=bA, gA=gA, beA=beA, wB=wB, bB=bB, gB=gB, beB=beB)

    return dict(w1=w1, b1=b1, g1=g1, be1=be1,
                w2=w2, b2=b2, g2=g2, be2=be2,
                res1=res(), res2=res())


# ------------------------------ pure-JAX reference ---------------------------
# Keeps the conv biases (the Pallas path drops them; they are cancelled exactly
# by the training-mode BN that follows every conv).  HIGHEST precision so the
# reference itself is full-f32.

def _ref_conv(x, w_oihw, b, stride, pad):
    w_hwio = jnp.transpose(w_oihw, (2, 3, 1, 0))
    y = lax.conv_general_dilated(x, w_hwio, (stride, stride),
                                 [(pad, pad), (pad, pad)],
                                 dimension_numbers=('NHWC', 'HWIO', 'NHWC'),
                                 precision=lax.Precision.HIGHEST)
    return y + b.reshape(1, 1, 1, -1)


def _ref_bn(x, g, be, relu=False):
    mean = jnp.mean(x, axis=(0, 1, 2), keepdims=True)
    var = jnp.mean(jnp.square(x - mean), axis=(0, 1, 2), keepdims=True)
    y = (x - mean) * (g.reshape(1, 1, 1, -1) * lax.rsqrt(var + BN_EPS)) + be.reshape(1, 1, 1, -1)
    return jnp.maximum(y, 0.0) if relu else y


def ref_forward(x_nchw, p):
    x = jnp.transpose(x_nchw, (0, 2, 3, 1))
    y = _ref_bn(_ref_conv(x, p['w1'], p['b1'], 2, 1), p['g1'], p['be1'], relu=True)
    y = _ref_bn(_ref_conv(y, p['w2'], p['b2'], 2, 1), p['g2'], p['be2'])

    def rb(xx, pr):
        h = _ref_bn(_ref_conv(jnp.maximum(xx, 0.0), pr['wA'], pr['bA'], 1, 1),
                    pr['gA'], pr['beA'], relu=True)
        h = _ref_bn(_ref_conv(h, pr['wB'], pr['bB'], 1, 0), pr['gB'], pr['beB'])
        return xx + h

    y = rb(y, p['res1'])
    y = rb(y, p['res2'])
    return jnp.transpose(y, (0, 3, 1, 2))


# ------------------------------ main ------------------------------------------

if __name__ == "__main__":
    key = jax.random.PRNGKey(0)
    kx, kp = jax.random.split(key)

    n_chan, hidden, zdim = 4, 32, 16
    batch, in_hw = 2, 16
    x = jax.random.normal(kx, (batch, n_chan, in_hw, in_hw), jnp.float32)
    params = init_params(kp, n_chan, hidden, zdim)

    # Pack weights / shift matrices ONCE, outside the jitted forward.
    packed = pack_params(params, batch, in_hw)

    fwd = jax.jit(functools.partial(oord_encoder_forward, hidden=hidden, zdim=zdim))
    out = jax.block_until_ready(fwd(x, packed))

    assert out.shape == (batch, zdim, in_hw // 4, in_hw // 4), out.shape

    ref = ref_forward(x, params)
    max_err = float(jnp.max(jnp.abs(out - ref)))
    assert max_err < 1e-3, f"max abs error vs reference: {max_err}"

    print("KERNEL_OK")
</pallas_src>

<mosaic_0001>
module attributes {stable_mosaic.version = 11 : i64} {
  func.func @_conv_bn_relu_kernel(%arg0: memref<128x64xf32, #tpu.memory_space<vmem>>, %arg1: memref<64x128xf32, #tpu.memory_space<vmem>>, %arg2: memref<1x128xf32, #tpu.memory_space<vmem>>, %arg3: memref<1x128xf32, #tpu.memory_space<vmem>>, %arg4: memref<128x128xf32, #tpu.memory_space<vmem>>) attributes {dimension_semantics = [], scalar_prefetch = 0 : i64, scratch_operands = 0 : i64, tpu.core_type = #tpu.core_type<tc>} {
    %c0 = arith.constant 0 : index
    %c0_0 = arith.constant 0 : index
    %0 = vector.load %arg0[%c0, %c0_0] : memref<128x64xf32, #tpu.memory_space<vmem>>, vector<128x64xf32>
    %c0_1 = arith.constant 0 : index
    %c0_2 = arith.constant 0 : index
    %1 = vector.load %arg1[%c0_1, %c0_2] : memref<64x128xf32, #tpu.memory_space<vmem>>, vector<64x128xf32>
    %cst = arith.constant dense<0.000000e+00> : vector<128x128xf32>
    %2 = tpu.matmul %0, %1, %cst {dimension_numbers = #tpu.dot_dimension_numbers<[1], [0], [0], [1], [0, 0, 1, 1], [], []>} : vector<128x64xf32>, vector<64x128xf32>, vector<128x128xf32> -> vector<128x128xf32>
    %c0_3 = arith.constant 0 : index
    %c0_4 = arith.constant 0 : index
    %3 = vector.load %arg2[%c0_3, %c0_4] : memref<1x128xf32, #tpu.memory_space<vmem>>, vector<1x128xf32>
    %c0_5 = arith.constant 0 : index
    %c0_6 = arith.constant 0 : index
    %4 = vector.load %arg3[%c0_5, %c0_6] : memref<1x128xf32, #tpu.memory_space<vmem>>, vector<1x128xf32>
    %cst_7 = arith.constant dense<0.000000e+00> : vector<128xf32>
    %5 = vector.multi_reduction <add>, %2, %cst_7 [0] : vector<128x128xf32> to vector<128xf32>
    %6 = vector.shape_cast %5 : vector<128xf32> to vector<1x128xf32>
    %cst_8 = arith.constant 7.812500e-03 : f32
    %7 = vector.broadcast %cst_8 : f32 to vector<1x128xf32>
    %8 = arith.mulf %6, %7 : vector<1x128xf32>
    %9 = arith.mulf %2, %2 : vector<128x128xf32>
    %cst_9 = arith.constant dense<0.000000e+00> : vector<128xf32>
    %10 = vector.multi_reduction <add>, %9, %cst_9 [0] : vector<128x128xf32> to vector<128xf32>
    %11 = vector.shape_cast %10 : vector<128xf32> to vector<1x128xf32>
    %cst_10 = arith.constant 7.812500e-03 : f32
    %12 = vector.broadcast %cst_10 : f32 to vector<1x128xf32>
    %13 = arith.mulf %11, %12 : vector<1x128xf32>
    %14 = arith.mulf %8, %8 : vector<1x128xf32>
    %15 = arith.subf %13, %14 : vector<1x128xf32>
    %16 = vector.broadcast %8 : vector<1x128xf32> to vector<128x128xf32>
    %17 = arith.subf %2, %16 : vector<128x128xf32>
    %cst_11 = arith.constant 9.99999974E-6 : f32
    %18 = vector.broadcast %cst_11 : f32 to vector<1x128xf32>
    %19 = arith.addf %15, %18 : vector<1x128xf32>
    %20 = math.rsqrt %19 : vector<1x128xf32>
    %21 = arith.mulf %3, %20 : vector<1x128xf32>
    %22 = vector.broadcast %21 : vector<1x128xf32> to vector<128x128xf32>
    %23 = arith.mulf %17, %22 : vector<128x128xf32>
    %24 = vector.broadcast %4 : vector<1x128xf32> to vector<128x128xf32>
    %25 = arith.addf %23, %24 : vector<128x128xf32>
    %cst_12 = arith.constant 0.000000e+00 : f32
    %26 = vector.broadcast %cst_12 : f32 to vector<128x128xf32>
    %27 = arith.maximumf %25, %26 : vector<128x128xf32>
    %c0_13 = arith.constant 0 : index
    %c0_14 = arith.constant 0 : index
    %28 = vector.load %arg4[%c0_13, %c0_14] : memref<128x128xf32, #tpu.memory_space<vmem>>, vector<128x128xf32>
    tpu.vector_store %arg4[%c0_13, %c0_14], %27 {strides = array<i32>} : memref<128x128xf32, #tpu.memory_space<vmem>>, vector<128x128xf32>,
    return
  }
}

module attributes {stable_mosaic.version = 11 : i64} {
  func.func @_conv2_res_kernel(%arg0: memref<32x512xf32, #tpu.memory_space<vmem>>, %arg1: memref<512x128xf32, #tpu.memory_space<vmem>>, %arg2: memref<1x128xf32, #tpu.memory_space<vmem>>, %arg3: memref<1x128xf32, #tpu.memory_space<vmem>>, %arg4: memref<9x32x32xf32, #tpu.memory_space<vmem>>, %arg5: memref<9x16x128xf32, #tpu.memory_space<vmem>>, %arg6: memref<1x128xf32, #tpu.memory_space<vmem>>, %arg7: memref<1x128xf32, #tpu.memory_space<vmem>>, %arg8: memref<16x128xf32, #tpu.memory_space<vmem>>, %arg9: memref<1x128xf32, #tpu.memory_space<vmem>>, %arg10: memref<1x128xf32, #tpu.memory_space<vmem>>, %arg11: memref<9x16x128xf32, #tpu.memory_space<vmem>>, %arg12: memref<1x128xf32, #tpu.memory_space<vmem>>, %arg13: memref<1x128xf32, #tpu.memory_space<vmem>>, %arg14: memref<16x128xf32, #tpu.memory_space<vmem>>, %arg15: memref<1x128xf32, #tpu.memory_space<vmem>>, %arg16: memref<1x128xf32, #tpu.memory_space<vmem>>, %arg17: memref<32x128xf32, #tpu.memory_space<vmem>>) attributes {dimension_semantics = [], scalar_prefetch = 0 : i64, scratch_operands = 0 : i64, tpu.core_type = #tpu.core_type<tc>} {
    %c0 = arith.constant 0 : index
    %c0_0 = arith.constant 0 : index
    %0 = vector.load %arg0[%c0, %c0_0] : memref<32x512xf32, #tpu.memory_space<vmem>>, vector<32x512xf32>
    %c0_1 = arith.constant 0 : index
    %c0_2 = arith.constant 0 : index
    %1 = vector.load %arg1[%c0_1, %c0_2] : memref<512x128xf32, #tpu.memory_space<vmem>>, vector<512x128xf32>
    %cst = arith.constant dense<0.000000e+00> : vector<32x128xf32>
    %2 = tpu.matmul %0, %1, %cst {dimension_numbers = #tpu.dot_dimension_numbers<[1], [0], [0], [1], [0, 0, 1, 1], [], []>} : vector<32x512xf32>, vector<512x128xf32>, vector<32x128xf32> -> vector<32x128xf32>
    %c0_3 = arith.constant 0 : index
    %c0_4 = arith.constant 0 : index
    %3 = vector.load %arg2[%c0_3, %c0_4] : memref<1x128xf32, #tpu.memory_space<vmem>>, vector<1x128xf32>
    %c0_5 = arith.constant 0 : index
    %c0_6 = arith.constant 0 : index
    %4 = vector.load %arg3[%c0_5, %c0_6] : memref<1x128xf32, #tpu.memory_space<vmem>>, vector<1x128xf32>
    %cst_7 = arith.constant dense<0.000000e+00> : vector<128xf32>
    %5 = vector.multi_reduction <add>, %2, %cst_7 [0] : vector<32x128xf32> to vector<128xf32>
    %6 = vector.shape_cast %5 : vector<128xf32> to vector<1x128xf32>
    %cst_8 = arith.constant 3.125000e-02 : f32
    %7 = vector.broadcast %cst_8 : f32 to vector<1x128xf32>
    %8 = arith.mulf %6, %7 : vector<1x128xf32>
    %9 = arith.mulf %2, %2 : vector<32x128xf32>
    %cst_9 = arith.constant dense<0.000000e+00> : vector<128xf32>
    %10 = vector.multi_reduction <add>, %9, %cst_9 [0] : vector<32x128xf32> to vector<128xf32>
    %11 = vector.shape_cast %10 : vector<128xf32> to vector<1x128xf32>
    %cst_10 = arith.constant 3.125000e-02 : f32
    %12 = vector.broadcast %cst_10 : f32 to vector<1x128xf32>
    %13 = arith.mulf %11, %12 : vector<1x128xf32>
    %14 = arith.mulf %8, %8 : vector<1x128xf32>
    %15 = arith.subf %13, %14 : vector<1x128xf32>
    %16 = vector.broadcast %8 : vector<1x128xf32> to vector<32x128xf32>
    %17 = arith.subf %2, %16 : vector<32x128xf32>
    %cst_11 = arith.constant 9.99999974E-6 : f32
    %18 = vector.broadcast %cst_11 : f32 to vector<1x128xf32>
    %19 = arith.addf %15, %18 : vector<1x128xf32>
    %20 = math.rsqrt %19 : vector<1x128xf32>
    %21 = arith.mulf %3, %20 : vector<1x128xf32>
    %22 = vector.broadcast %21 : vector<1x128xf32> to vector<32x128xf32>
    %23 = arith.mulf %17, %22 : vector<32x128xf32>
    %24 = vector.broadcast %4 : vector<1x128xf32> to vector<32x128xf32>
    %25 = arith.addf %23, %24 : vector<32x128xf32>
    %26 = vector.extract_strided_slice %25 {offsets = [0, 0], sizes = [32, 16], strides = [1, 1]} : vector<32x128xf32> to vector<32x16xf32>
    %cst_12 = arith.constant 0.000000e+00 : f32
    %27 = vector.broadcast %cst_12 : f32 to vector<32x16xf32>
    %28 = arith.maximumf %26, %27 : vector<32x16xf32>
    %cst_13 = arith.constant 0.000000e+00 : f32
    %29 = vector.broadcast %cst_13 : f32 to vector<32x128xf32>
    %c0_14 = arith.constant 0 : index
    %c0_15 = arith.constant 0 : index
    %c0_16 = arith.constant 0 : index
    %30 = vector.load %arg5[%c0_14, %c0_15, %c0_16] : memref<9x16x128xf32, #tpu.memory_space<vmem>>, vector<1x16x128xf32>
    %31 = vector.shape_cast %30 : vector<1x16x128xf32> to vector<16x128xf32>
    %cst_17 = arith.constant dense<0.000000e+00> : vector<32x128xf32>
    %32 = tpu.matmul %28, %31, %cst_17 {dimension_numbers = #tpu.dot_dimension_numbers<[1], [0], [0], [1], [0, 0, 1, 1], [], []>} : vector<32x16xf32>, vector<16x128xf32>, vector<32x128xf32> -> vector<32x128xf32>
    %c0_18 = arith.constant 0 : index
    %c0_19 = arith.constant 0 : index
    %c0_20 = arith.constant 0 : index
    %33 = vector.load %arg4[%c0_18, %c0_19, %c0_20] : memref<9x32x32xf32, #tpu.memory_space<vmem>>, vector<1x32x32xf32>
    %34 = vector.shape_cast %33 : vector<1x32x32xf32> to vector<32x32xf32>
    %cst_21 = arith.constant dense<0.000000e+00> : vector<32x128xf32>
    %35 = tpu.matmul %34, %32, %cst_21 {dimension_numbers = #tpu.dot_dimension_numbers<[1], [0], [0], [1], [0, 0, 1, 1], [], []>} : vector<32x32xf32>, vector<32x128xf32>, vector<32x128xf32> -> vector<32x128xf32>
    %36 = arith.addf %29, %35 : vector<32x128xf32>
    %c1 = arith.constant 1 : index
    %c0_22 = arith.constant 0 : index
    %c0_23 = arith.constant 0 : index
    %37 = vector.load %arg5[%c1, %c0_22, %c0_23] : memref<9x16x128xf32, #tpu.memory_space<vmem>>, vector<1x16x128xf32>
    %38 = vector.shape_cast %37 : vector<1x16x128xf32> to vector<16x128xf32>
    %cst_24 = arith.constant dense<0.000000e+00> : vector<32x128xf32>
    %39 = tpu.matmul %28, %38, %cst_24 {dimension_numbers = #tpu.dot_dimension_numbers<[1], [0], [0], [1], [0, 0, 1, 1], [], []>} : vector<32x16xf32>, vector<16x128xf32>, vector<32x128xf32> -> vector<32x128xf32>
    %c1_25 = arith.constant 1 : index
    %c0_26 = arith.constant 0 : index
    %c0_27 = arith.constant 0 : index
    %40 = vector.load %arg4[%c1_25, %c0_26, %c0_27] : memref<9x32x32xf32, #tpu.memory_space<vmem>>, vector<1x32x32xf32>
    %41 = vector.shape_cast %40 : vector<1x32x32xf32> to vector<32x32xf32>
    %cst_28 = arith.constant dense<0.000000e+00> : vector<32x128xf32>
    %42 = tpu.matmul %41, %39, %cst_28 {dimension_numbers = #tpu.dot_dimension_numbers<[1], [0], [0], [1], [0, 0, 1, 1], [], []>} : vector<32x32xf32>, vector<32x128xf32>, vector<32x128xf32> -> vector<32x128xf32>
    %43 = arith.addf %36, %42 : vector<32x128xf32>
    %c2 = arith.constant 2 : index
    %c0_29 = arith.constant 0 : index
    %c0_30 = arith.constant 0 : index
    %44 = vector.load %arg5[%c2, %c0_29, %c0_30] : memref<9x16x128xf32, #tpu.memory_space<vmem>>, vector<1x16x128xf32>
    %45 = vector.shape_cast %44 : vector<1x16x128xf32> to vector<16x128xf32>
    %cst_31 = arith.constant dense<0.000000e+00> : vector<32x128xf32>
    %46 = tpu.matmul %28, %45, %cst_31 {dimension_numbers = #tpu.dot_dimension_numbers<[1], [0], [0], [1], [0, 0, 1, 1], [], []>} : vector<32x16xf32>, vector<16x128xf32>, vector<32x128xf32> -> vector<32x128xf32>
    %c2_32 = arith.constant 2 : index
    %c0_33 = arith.constant 0 : index
    %c0_34 = arith.constant 0 : index
    %47 = vector.load %arg4[%c2_32, %c0_33, %c0_34] : memref<9x32x32xf32, #tpu.memory_space<vmem>>, vector<1x32x32xf32>
    %48 = vector.shape_cast %47 : vector<1x32x32xf32> to vector<32x32xf32>
    %cst_35 = arith.constant dense<0.000000e+00> : vector<32x128xf32>
    %49 = tpu.matmul %48, %46, %cst_35 {dimension_numbers = #tpu.dot_dimension_numbers<[1], [0], [0], [1], [0, 0, 1, 1], [], []>} : vector<32x32xf32>, vector<32x128xf32>, vector<32x128xf32> -> vector<32x128xf32>
    %50 = arith.addf %43, %49 : vector<32x128xf32>
    %c3 = arith.constant 3 : index
    %c0_36 = arith.constant 0 : index
    %c0_37 = arith.constant 0 : index
    %51 = vector.load %arg5[%c3, %c0_36, %c0_37] : memref<9x16x128xf32, #tpu.memory_space<vmem>>, vector<1x16x128xf32>
    %52 = vector.shape_cast %51 : vector<1x16x128xf32> to vector<16x128xf32>
    %cst_38 = arith.constant dense<0.000000e+00> : vector<32x128xf32>
    %53 = tpu.matmul %28, %52, %cst_38 {dimension_numbers = #tpu.dot_dimension_numbers<[1], [0], [0], [1], [0, 0, 1, 1], [], []>} : vector<32x16xf32>, vector<16x128xf32>, vector<32x128xf32> -> vector<32x128xf32>
    %c3_39 = arith.constant 3 : index
    %c0_40 = arith.constant 0 : index
    %c0_41 = arith.constant 0 : index
    %54 = vector.load %arg4[%c3_39, %c0_40, %c0_41] : memref<9x32x32xf32, #tpu.memory_space<vmem>>, vector<1x32x32xf32>
    %55 = vector.shape_cast %54 : vector<1x32x32xf32> to vector<32x32xf32>
    %cst_42 = arith.constant dense<0.000000e+00> : vector<32x128xf32>
    %56 = tpu.matmul %55, %53, %cst_42 {dimension_numbers = #tpu.dot_dimension_numbers<[1], [0], [0], [1], [0, 0, 1, 1], [], []>} : vector<32x32xf32>, vector<32x128xf32>, vector<32x128xf32> -> vector<32x128xf32>
    %57 = arith.addf %50, %56 : vector<32x128xf32>
    %c4 = arith.constant 4 : index
    %c0_43 = arith.constant 0 : index
    %c0_44 = arith.constant 0 : index
    %58 = vector.load %arg5[%c4, %c0_43, %c0_44] : memref<9x16x128xf32, #tpu.memory_space<vmem>>, vector<1x16x128xf32>
    %59 = vector.shape_cast %58 : vector<1x16x128xf32> to vector<16x128xf32>
    %cst_45 = arith.constant dense<0.000000e+00> : vector<32x128xf32>
    %60 = tpu.matmul %28, %59, %cst_45 {dimension_numbers = #tpu.dot_dimension_numbers<[1], [0], [0], [1], [0, 0, 1, 1], [], []>} : vector<32x16xf32>, vector<16x128xf32>, vector<32x128xf32> -> vector<32x128xf32>
    %c4_46 = arith.constant 4 : index
    %c0_47 = arith.constant 0 : index
    %c0_48 = arith.constant 0 : index
    %61 = vector.load %arg4[%c4_46, %c0_47, %c0_48] : memref<9x32x32xf32, #tpu.memory_space<vmem>>, vector<1x32x32xf32>
    %62 = vector.shape_cast %61 : vector<1x32x32xf32> to vector<32x32xf32>
    %cst_49 = arith.constant dense<0.000000e+00> : vector<32x128xf32>
    %63 = tpu.matmul %62, %60, %cst_49 {dimension_numbers = #tpu.dot_dimension_numbers<[1], [0], [0], [1], [0, 0, 1, 1], [], []>} : vector<32x32xf32>, vector<32x128xf32>, vector<32x128xf32> -> vector<32x128xf32>
    %64 = arith.addf %57, %63 : vector<32x128xf32>
    %c5 = arith.constant 5 : index
    %c0_50 = arith.constant 0 : index
    %c0_51 = arith.constant 0 : index
    %65 = vector.load %arg5[%c5, %c0_50, %c0_51] : memref<9x16x128xf32, #tpu.memory_space<vmem>>, vector<1x16x128xf32>
    %66 = vector.shape_cast %65 : vector<1x16x128xf32> to vector<16x128xf32>
    %cst_52 = arith.constant dense<0.000000e+00> : vector<32x128xf32>
    %67 = tpu.matmul %28, %66, %cst_52 {dimension_numbers = #tpu.dot_dimension_numbers<[1], [0], [0], [1], [0, 0, 1, 1], [], []>} : vector<32x16xf32>, vector<16x128xf32>, vector<32x128xf32> -> vector<32x128xf32>
    %c5_53 = arith.constant 5 : index
    %c0_54 = arith.constant 0 : index
    %c0_55 = arith.constant 0 : index
    %68 = vector.load %arg4[%c5_53, %c0_54, %c0_55] : memref<9x32x32xf32, #tpu.memory_space<vmem>>, vector<1x32x32xf32>
    %69 = vector.shape_cast %68 : vector<1x32x32xf32> to vector<32x32xf32>
    %cst_56 = arith.constant dense<0.000000e+00> : vector<32x128xf32>
    %70 = tpu.matmul %69, %67, %cst_56 {dimension_numbers = #tpu.dot_dimension_numbers<[1], [0], [0], [1], [0, 0, 1, 1], [], []>} : vector<32x32xf32>, vector<32x128xf32>, vector<32x128xf32> -> vector<32x128xf32>
    %71 = arith.addf %64, %70 : vector<32x128xf32>
    %c6 = arith.constant 6 : index
    %c0_57 = arith.constant 0 : index
    %c0_58 = arith.constant 0 : index
    %72 = vector.load %arg5[%c6, %c0_57, %c0_58] : memref<9x16x128xf32, #tpu.memory_space<vmem>>, vector<1x16x128xf32>
    %73 = vector.shape_cast %72 : vector<1x16x128xf32> to vector<16x128xf32>
    %cst_59 = arith.constant dense<0.000000e+00> : vector<32x128xf32>
    %74 = tpu.matmul %28, %73, %cst_59 {dimension_numbers = #tpu.dot_dimension_numbers<[1], [0], [0], [1], [0, 0, 1, 1], [], []>} : vector<32x16xf32>, vector<16x128xf32>, vector<32x128xf32> -> vector<32x128xf32>
    %c6_60 = arith.constant 6 : index
    %c0_61 = arith.constant 0 : index
    %c0_62 = arith.constant 0 : index
    %75 = vector.load %arg4[%c6_60, %c0_61, %c0_62] : memref<9x32x32xf32, #tpu.memory_space<vmem>>, vector<1x32x32xf32>
    %76 = vector.shape_cast %75 : vector<1x32x32xf32> to vector<32x32xf32>
    %cst_63 = arith.constant dense<0.000000e+00> : vector<32x128xf32>
    %77 = tpu.matmul %76, %74, %cst_63 {dimension_numbers = #tpu.dot_dimension_numbers<[1], [0], [0], [1], [0, 0, 1, 1], [], []>} : vector<32x32xf32>, vector<32x128xf32>, vector<32x128xf32> -> vector<32x128xf32>
    %78 = arith.addf %71, %77 : vector<32x128xf32>
    %c7 = arith.constant 7 : index
    %c0_64 = arith.constant 0 : index
    %c0_65 = arith.constant 0 : index
    %79 = vector.load %arg5[%c7, %c0_64, %c0_65] : memref<9x16x128xf32, #tpu.memory_space<vmem>>, vector<1x16x128xf32>
    %80 = vector.shape_cast %79 : vector<1x16x128xf32> to vector<16x128xf32>
    %cst_66 = arith.constant dense<0.000000e+00> : vector<32x128xf32>
    %81 = tpu.matmul %28, %80, %cst_66 {dimension_numbers = #tpu.dot_dimension_numbers<[1], [0], [0], [1], [0, 0, 1, 1], [], []>} : vector<32x16xf32>, vector<16x128xf32>, vector<32x128xf32> -> vector<32x128xf32>
    %c7_67 = arith.constant 7 : index
    %c0_68 = arith.constant 0 : index
    %c0_69 = arith.constant 0 : index
    %82 = vector.load %arg4[%c7_67, %c0_68, %c0_69] : memref<9x32x32xf32, #tpu.memory_space<vmem>>, vector<1x32x32xf32>
    %83 = vector.shape_cast %82 : vector<1x32x32xf32> to vector<32x32xf32>
    %cst_70 = arith.constant dense<0.000000e+00> : vector<32x128xf32>
    %84 = tpu.matmul %83, %81, %cst_70 {dimension_numbers = #tpu.dot_dimension_numbers<[1], [0], [0], [1], [0, 0, 1, 1], [], []>} : vector<32x32xf32>, vector<32x128xf32>, vector<32x128xf32> -> vector<32x128xf32>
    %85 = arith.addf %78, %84 : vector<32x128xf32>
    %c8 = arith.constant 8 : index
    %c0_71 = arith.constant 0 : index
    %c0_72 = arith.constant 0 : index
    %86 = vector.load %arg5[%c8, %c0_71, %c0_72] : memref<9x16x128xf32, #tpu.memory_space<vmem>>, vector<1x16x128xf32>
    %87 = vector.shape_cast %86 : vector<1x16x128xf32> to vector<16x128xf32>
    %cst_73 = arith.constant dense<0.000000e+00> : vector<32x128xf32>
    %88 = tpu.matmul %28, %87, %cst_73 {dimension_numbers = #tpu.dot_dimension_numbers<[1], [0], [0], [1], [0, 0, 1, 1], [], []>} : vector<32x16xf32>, vector<16x128xf32>, vector<32x128xf32> -> vector<32x128xf32>
    %c8_74 = arith.constant 8 : index
    %c0_75 = arith.constant 0 : index
    %c0_76 = arith.constant 0 : index
    %89 = vector.load %arg4[%c8_74, %c0_75, %c0_76] : memref<9x32x32xf32, #tpu.memory_space<vmem>>, vector<1x32x32xf32>
    %90 = vector.shape_cast %89 : vector<1x32x32xf32> to vector<32x32xf32>
    %cst_77 = arith.constant dense<0.000000e+00> : vector<32x128xf32>
    %91 = tpu.matmul %90, %88, %cst_77 {dimension_numbers = #tpu.dot_dimension_numbers<[1], [0], [0], [1], [0, 0, 1, 1], [], []>} : vector<32x32xf32>, vector<32x128xf32>, vector<32x128xf32> -> vector<32x128xf32>
    %92 = arith.addf %85, %91 : vector<32x128xf32>
    %c0_78 = arith.constant 0 : index
    %c0_79 = arith.constant 0 : index
    %93 = vector.load %arg6[%c0_78, %c0_79] : memref<1x128xf32, #tpu.memory_space<vmem>>, vector<1x128xf32>
    %c0_80 = arith.constant 0 : index
    %c0_81 = arith.constant 0 : index
    %94 = vector.load %arg7[%c0_80, %c0_81] : memref<1x128xf32, #tpu.memory_space<vmem>>, vector<1x128xf32>
    %cst_82 = arith.constant dense<0.000000e+00> : vector<128xf32>
    %95 = vector.multi_reduction <add>, %92, %cst_82 [0] : vector<32x128xf32> to vector<128xf32>
    %96 = vector.shape_cast %95 : vector<128xf32> to vector<1x128xf32>
    %cst_83 = arith.constant 3.125000e-02 : f32
    %97 = vector.broadcast %cst_83 : f32 to vector<1x128xf32>
    %98 = arith.mulf %96, %97 : vector<1x128xf32>
    %99 = arith.mulf %92, %92 : vector<32x128xf32>
    %cst_84 = arith.constant dense<0.000000e+00> : vector<128xf32>
    %100 = vector.multi_reduction <add>, %99, %cst_84 [0] : vector<32x128xf32> to vector<128xf32>
    %101 = vector.shape_cast %100 : vector<128xf32> to vector<1x128xf32>
    %cst_85 = arith.constant 3.125000e-02 : f32
    %102 = vector.broadcast %cst_85 : f32 to vector<1x128xf32>
    %103 = arith.mulf %101, %102 : vector<1x128xf32>
    %104 = arith.mulf %98, %98 : vector<1x128xf32>
    %105 = arith.subf %103, %104 : vector<1x128xf32>
    %106 = vector.broadcast %98 : vector<1x128xf32> to vector<32x128xf32>
    %107 = arith.subf %92, %106 : vector<32x128xf32>
    %cst_86 = arith.constant 9.99999974E-6 : f32
    %108 = vector.broadcast %cst_86 : f32 to vector<1x128xf32>
    %109 = arith.addf %105, %108 : vector<1x128xf32>
    %110 = math.rsqrt %109 : vector<1x128xf32>
    %111 = arith.mulf %93, %110 : vector<1x128xf32>
    %112 = vector.broadcast %111 : vector<1x128xf32> to vector<32x128xf32>
    %113 = arith.mulf %107, %112 : vector<32x128xf32>
    %114 = vector.broadcast %94 : vector<1x128xf32> to vector<32x128xf32>
    %115 = arith.addf %113, %114 : vector<32x128xf32>
    %cst_87 = arith.constant 0.000000e+00 : f32
    %116 = vector.broadcast %cst_87 : f32 to vector<32x128xf32>
    %117 = arith.maximumf %115, %116 : vector<32x128xf32>
    %118 = vector.extract_strided_slice %117 {offsets = [0, 0], sizes = [32, 16], strides = [1, 1]} : vector<32x128xf32> to vector<32x16xf32>
    %c0_88 = arith.constant 0 : index
    %c0_89 = arith.constant 0 : index
    %119 = vector.load %arg8[%c0_88, %c0_89] : memref<16x128xf32, #tpu.memory_space<vmem>>, vector<16x128xf32>
    %cst_90 = arith.constant dense<0.000000e+00> : vector<32x128xf32>
    %120 = tpu.matmul %118, %119, %cst_90 {dimension_numbers = #tpu.dot_dimension_numbers<[1], [0], [0], [1], [0, 0, 1, 1], [], []>} : vector<32x16xf32>, vector<16x128xf32>, vector<32x128xf32> -> vector<32x128xf32>
    %c0_91 = arith.constant 0 : index
    %c0_92 = arith.constant 0 : index
    %121 = vector.load %arg9[%c0_91, %c0_92] : memref<1x128xf32, #tpu.memory_space<vmem>>, vector<1x128xf32>
    %c0_93 = arith.constant 0 : index
    %c0_94 = arith.constant 0 : index
    %122 = vector.load %arg10[%c0_93, %c0_94] : memref<1x128xf32, #tpu.memory_space<vmem>>, vector<1x128xf32>
    %cst_95 = arith.constant dense<0.000000e+00> : vector<128xf32>
    %123 = vector.multi_reduction <add>, %120, %cst_95 [0] : vector<32x128xf32> to vector<128xf32>
    %124 = vector.shape_cast %123 : vector<128xf32> to vector<1x128xf32>
    %cst_96 = arith.constant 3.125000e-02 : f32
    %125 = vector.broadcast %cst_96 : f32 to vector<1x128xf32>
    %126 = arith.mulf %124, %125 : vector<1x128xf32>
    %127 = arith.mulf %120, %120 : vector<32x128xf32>
    %cst_97 = arith.constant dense<0.000000e+00> : vector<128xf32>
    %128 = vector.multi_reduction <add>, %127, %cst_97 [0] : vector<32x128xf32> to vector<128xf32>
    %129 = vector.shape_cast %128 : vector<128xf32> to vector<1x128xf32>
    %cst_98 = arith.constant 3.125000e-02 : f32
    %130 = vector.broadcast %cst_98 : f32 to vector<1x128xf32>
    %131 = arith.mulf %129, %130 : vector<1x128xf32>
    %132 = arith.mulf %126, %126 : vector<1x128xf32>
    %133 = arith.subf %131, %132 : vector<1x128xf32>
    %134 = vector.broadcast %126 : vector<1x128xf32> to vector<32x128xf32>
    %135 = arith.subf %120, %134 : vector<32x128xf32>
    %cst_99 = arith.constant 9.99999974E-6 : f32
    %136 = vector.broadcast %cst_99 : f32 to vector<1x128xf32>
    %137 = arith.addf %133, %136 : vector<1x128xf32>
    %138 = math.rsqrt %137 : vector<1x128xf32>
    %139 = arith.mulf %121, %138 : vector<1x128xf32>
    %140 = vector.broadcast %139 : vector<1x128xf32> to vector<32x128xf32>
    %141 = arith.mulf %135, %140 : vector<32x128xf32>
    %142 = vector.broadcast %122 : vector<1x128xf32> to vector<32x128xf32>
    %143 = arith.addf %141, %142 : vector<32x128xf32>
    %144 = arith.addf %25, %143 : vector<32x128xf32>
    %145 = vector.extract_strided_slice %144 {offsets = [0, 0], sizes = [32, 16], strides = [1, 1]} : vector<32x128xf32> to vector<32x16xf32>
    %cst_100 = arith.constant 0.000000e+00 : f32
    %146 = vector.broadcast %cst_100 : f32 to vector<32x16xf32>
    %147 = arith.maximumf %145, %146 : vector<32x16xf32>
    %cst_101 = arith.constant 0.000000e+00 : f32
    %148 = vector.broadcast %cst_101 : f32 to vector<32x128xf32>
    %c0_102 = arith.constant 0 : index
    %c0_103 = arith.constant 0 : index
    %c0_104 = arith.constant 0 : index
    %149 = vector.load %arg11[%c0_102, %c0_103, %c0_104] : memref<9x16x128xf32, #tpu.memory_space<vmem>>, vector<1x16x128xf32>
    %150 = vector.shape_cast %149 : vector<1x16x128xf32> to vector<16x128xf32>
    %cst_105 = arith.constant dense<0.000000e+00> : vector<32x128xf32>
    %151 = tpu.matmul %147, %150, %cst_105 {dimension_numbers = #tpu.dot_dimension_numbers<[1], [0], [0], [1], [0, 0, 1, 1], [], []>} : vector<32x16xf32>, vector<16x128xf32>, vector<32x128xf32> -> vector<32x128xf32>
    %c0_106 = arith.constant 0 : index
    %c0_107 = arith.constant 0 : index
    %c0_108 = arith.constant 0 : index
    %152 = vector.load %arg4[%c0_106, %c0_107, %c0_108] : memref<9x32x32xf32, #tpu.memory_space<vmem>>, vector<1x32x32xf32>
    %153 = vector.shape_cast %152 : vector<1x32x32xf32> to vector<32x32xf32>
    %cst_109 = arith.constant dense<0.000000e+00> : vector<32x128xf32>
    %154 = tpu.matmul %153, %151, %cst_109 {dimension_numbers = #tpu.dot_dimension_numbers<[1], [0], [0], [1], [0, 0, 1, 1], [], []>} : vector<32x32xf32>, vector<32x128xf32>, vector<32x128xf32> -> vector<32x128xf32>
    %155 = arith.addf %148, %154 : vector<32x128xf32>
    %c1_110 = arith.constant 1 : index
    %c0_111 = arith.constant 0 : index
    %c0_112 = arith.constant 0 : index
    %156 = vector.load %arg11[%c1_110, %c0_111, %c0_112] : memref<9x16x128xf32, #tpu.memory_space<vmem>>, vector<1x16x128xf32>
    %157 = vector.shape_cast %156 : vector<1x16x128xf32> to vector<16x128xf32>
    %cst_113 = arith.constant dense<0.000000e+00> : vector<32x128xf32>
    %158 = tpu.matmul %147, %157, %cst_113 {dimension_numbers = #tpu.dot_dimension_numbers<[1], [0], [0], [1], [0, 0, 1, 1], [], []>} : vector<32x16xf32>, vector<16x128xf32>, vector<32x128xf32> -> vector<32x128xf32>
    %c1_114 = arith.constant 1 : index
    %c0_115 = arith.constant 0 : index
    %c0_116 = arith.constant 0 : index
    %159 = vector.load %arg4[%c1_114, %c0_115, %c0_116] : memref<9x32x32xf32, #tpu.memory_space<vmem>>, vector<1x32x32xf32>
    %160 = vector.shape_cast %159 : vector<1x32x32xf32> to vector<32x32xf32>
    %cst_117 = arith.constant dense<0.000000e+00> : vector<32x128xf32>
    %161 = tpu.matmul %160, %158, %cst_117 {dimension_numbers = #tpu.dot_dimension_numbers<[1], [0], [0], [1], [0, 0, 1, 1], [], []>} : vector<32x32xf32>, vector<32x128xf32>, vector<32x128xf32> -> vector<32x128xf32>
    %162 = arith.addf %155, %161 : vector<32x128xf32>
    %c2_118 = arith.constant 2 : index
    %c0_119 = arith.constant 0 : index
    %c0_120 = arith.constant 0 : index
    %163 = vector.load %arg11[%c2_118, %c0_119, %c0_120] : memref<9x16x128xf32, #tpu.memory_space<vmem>>, vector<1x16x128xf32>
    %164 = vector.shape_cast %163 : vector<1x16x128xf32> to vector<16x128xf32>
    %cst_121 = arith.constant dense<0.000000e+00> : vector<32x128xf32>
    %165 = tpu.matmul %147, %164, %cst_121 {dimension_numbers = #tpu.dot_dimension_numbers<[1], [0], [0], [1], [0, 0, 1, 1], [], []>} : vector<32x16xf32>, vector<16x128xf32>, vector<32x128xf32> -> vector<32x128xf32>
    %c2_122 = arith.constant 2 : index
    %c0_123 = arith.constant 0 : index
    %c0_124 = arith.constant 0 : index
    %166 = vector.load %arg4[%c2_122, %c0_123, %c0_124] : memref<9x32x32xf32, #tpu.memory_space<vmem>>, vector<1x32x32xf32>
    %167 = vector.shape_cast %166 : vector<1x32x32xf32> to vector<32x32xf32>
    %cst_125 = arith.constant dense<0.000000e+00> : vector<32x128xf32>
    %168 = tpu.matmul %167, %165, %cst_125 {dimension_numbers = #tpu.dot_dimension_numbers<[1], [0], [0], [1], [0, 0, 1, 1], [], []>} : vector<32x32xf32>, vector<32x128xf32>, vector<32x128xf32> -> vector<32x128xf32>
    %169 = arith.addf %162, %168 : vector<32x128xf32>
    %c3_126 = arith.constant 3 : index
    %c0_127 = arith.constant 0 : index
    %c0_128 = arith.constant 0 : index
    %170 = vector.load %arg11[%c3_126, %c0_127, %c0_128] : memref<9x16x128xf32, #tpu.memory_space<vmem>>, vector<1x16x128xf32>
    %171 = vector.shape_cast %170 : vector<1x16x128xf32> to vector<16x128xf32>
    %cst_129 = arith.constant dense<0.000000e+00> : vector<32x128xf32>
    %172 = tpu.matmul %147, %171, %cst_129 {dimension_numbers = #tpu.dot_dimension_numbers<[1], [0], [0], [1], [0, 0, 1, 1], [], []>} : vector<32x16xf32>, vector<16x128xf32>, vector<32x128xf32> -> vector<32x128xf32>
    %c3_130 = arith.constant 3 : index
    %c0_131 = arith.constant 0 : index
    %c0_132 = arith.constant 0 : index
    %173 = vector.load %arg4[%c3_130, %c0_131, %c0_132] : memref<9x32x32xf32, #tpu.memory_space<vmem>>, vector<1x32x32xf32>
    %174 = vector.shape_cast %173 : vector<1x32x32xf32> to vector<32x32xf32>
    %cst_133 = arith.constant dense<0.000000e+00> : vector<32x128xf32>
    %175 = tpu.matmul %174, %172, %cst_133 {dimension_numbers = #tpu.dot_dimension_numbers<[1], [0], [0], [1], [0, 0, 1, 1], [], []>} : vector<32x32xf32>, vector<32x128xf32>, vector<32x128xf32> -> vector<32x128xf32>
    %176 = arith.addf %169, %175 : vector<32x128xf32>
    %c4_134 = arith.constant 4 : index
    %c0_135 = arith.constant 0 : index
    %c0_136 = arith.constant 0 : index
    %177 = vector.load %arg11[%c4_134, %c0_135, %c0_136] : memref<9x16x128xf32, #tpu.memory_space<vmem>>, vector<1x16x128xf32>
    %178 = vector.shape_cast %177 : vector<1x16x128xf32> to vector<16x128xf32>
    %cst_137 = arith.constant dense<0.000000e+00> : vector<32x128xf32>
    %179 = tpu.matmul %147, %178, %cst_137 {dimension_numbers = #tpu.dot_dimension_numbers<[1], [0], [0], [1], [0, 0, 1, 1], [], []>} : vector<32x16xf32>, vector<16x128xf32>, vector<32x128xf32> -> vector<32x128xf32>
    %c4_138 = arith.constant 4 : index
    %c0_139 = arith.constant 0 : index
    %c0_140 = arith.constant 0 : index
    %180 = vector.load %arg4[%c4_138, %c0_139, %c0_140] : memref<9x32x32xf32, #tpu.memory_space<vmem>>, vector<1x32x32xf32>
    %181 = vector.shape_cast %180 : vector<1x32x32xf32> to vector<32x32xf32>
    %cst_141 = arith.constant dense<0.000000e+00> : vector<32x128xf32>
    %182 = tpu.matmul %181, %179, %cst_141 {dimension_numbers = #tpu.dot_dimension_numbers<[1], [0], [0], [1], [0, 0, 1, 1], [], []>} : vector<32x32xf32>, vector<32x128xf32>, vector<32x128xf32> -> vector<32x128xf32>
    %183 = arith.addf %176, %182 : vector<32x128xf32>
    %c5_142 = arith.constant 5 : index
    %c0_143 = arith.constant 0 : index
    %c0_144 = arith.constant 0 : index
    %184 = vector.load %arg11[%c5_142, %c0_143, %c0_144] : memref<9x16x128xf32, #tpu.memory_space<vmem>>, vector<1x16x128xf32>
    %185 = vector.shape_cast %184 : vector<1x16x128xf32> to vector<16x128xf32>
    %cst_145 = arith.constant dense<0.000000e+00> : vector<32x128xf32>
    %186 = tpu.matmul %147, %185, %cst_145 {dimension_numbers = #tpu.dot_dimension_numbers<[1], [0], [0], [1], [0, 0, 1, 1], [], []>} : vector<32x16xf32>, vector<16x128xf32>, vector<32x128xf32> -> vector<32x128xf32>
    %c5_146 = arith.constant 5 : index
    %c0_147 = arith.constant 0 : index
    %c0_148 = arith.constant 0 : index
    %187 = vector.load %arg4[%c5_146, %c0_147, %c0_148] : memref<9x32x32xf32, #tpu.memory_space<vmem>>, vector<1x32x32xf32>
    %188 = vector.shape_cast %187 : vector<1x32x32xf32> to vector<32x32xf32>
    %cst_149 = arith.constant dense<0.000000e+00> : vector<32x128xf32>
    %189 = tpu.matmul %188, %186, %cst_149 {dimension_numbers = #tpu.dot_dimension_numbers<[1], [0], [0], [1], [0, 0, 1, 1], [], []>} : vector<32x32xf32>, vector<32x128xf32>, vector<32x128xf32> -> vector<32x128xf32>
    %190 = arith.addf %183, %189 : vector<32x128xf32>
    %c6_150 = arith.constant 6 : index
    %c0_151 = arith.constant 0 : index
    %c0_152 = arith.constant 0 : index
    %191 = vector.load %arg11[%c6_150, %c0_151, %c0_152] : memref<9x16x128xf32, #tpu.memory_space<vmem>>, vector<1x16x128xf32>
    %192 = vector.shape_cast %191 : vector<1x16x128xf32> to vector<16x128xf32>
    %cst_153 = arith.constant dense<0.000000e+00> : vector<32x128xf32>
    %193 = tpu.matmul %147, %192, %cst_153 {dimension_numbers = #tpu.dot_dimension_numbers<[1], [0], [0], [1], [0, 0, 1, 1], [], []>} : vector<32x16xf32>, vector<16x128xf32>, vector<32x128xf32> -> vector<32x128xf32>
    %c6_154 = arith.constant 6 : index
    %c0_155 = arith.constant 0 : index
    %c0_156 = arith.constant 0 : index
    %194 = vector.load %arg4[%c6_154, %c0_155, %c0_156] : memref<9x32x32xf32, #tpu.memory_space<vmem>>, vector<1x32x32xf32>
    %195 = vector.shape_cast %194 : vector<1x32x32xf32> to vector<32x32xf32>
    %cst_157 = arith.constant dense<0.000000e+00> : vector<32x128xf32>
    %196 = tpu.matmul %195, %193, %cst_157 {dimension_numbers = #tpu.dot_dimension_numbers<[1], [0], [0], [1], [0, 0, 1, 1], [], []>} : vector<32x32xf32>, vector<32x128xf32>, vector<32x128xf32> -> vector<32x128xf32>
    %197 = arith.addf %190, %196 : vector<32x128xf32>
    %c7_158 = arith.constant 7 : index
    %c0_159 = arith.constant 0 : index
    %c0_160 = arith.constant 0 : index
    %198 = vector.load %arg11[%c7_158, %c0_159, %c0_160] : memref<9x16x128xf32, #tpu.memory_space<vmem>>, vector<1x16x128xf32>
    %199 = vector.shape_cast %198 : vector<1x16x128xf32> to vector<16x128xf32>
    %cst_161 = arith.constant dense<0.000000e+00> : vector<32x128xf32>
    %200 = tpu.matmul %147, %199, %cst_161 {dimension_numbers = #tpu.dot_dimension_numbers<[1], [0], [0], [1], [0, 0, 1, 1], [], []>} : vector<32x16xf32>, vector<16x128xf32>, vector<32x128xf32> -> vector<32x128xf32>
    %c7_162 = arith.constant 7 : index
    %c0_163 = arith.constant 0 : index
    %c0_164 = arith.constant 0 : index
    %201 = vector.load %arg4[%c7_162, %c0_163, %c0_164] : memref<9x32x32xf32, #tpu.memory_space<vmem>>, vector<1x32x32xf32>
    %202 = vector.shape_cast %201 : vector<1x32x32xf32> to vector<32x32xf32>
    %cst_165 = arith.constant dense<0.000000e+00> : vector<32x128xf32>
    %203 = tpu.matmul %202, %200, %cst_165 {dimension_numbers = #tpu.dot_dimension_numbers<[1], [0], [0], [1], [0, 0, 1, 1], [], []>} : vector<32x32xf32>, vector<32x128xf32>, vector<32x128xf32> -> vector<32x128xf32>
    %204 = arith.addf %197, %203 : vector<32x128xf32>
    %c8_166 = arith.constant 8 : index
    %c0_167 = arith.constant 0 : index
    %c0_168 = arith.constant 0 : index
    %205 = vector.load %arg11[%c8_166, %c0_167, %c0_168] : memref<9x16x128xf32, #tpu.memory_space<vmem>>, vector<1x16x128xf32>
    %206 = vector.shape_cast %205 : vector<1x16x128xf32> to vector<16x128xf32>
    %cst_169 = arith.constant dense<0.000000e+00> : vector<32x128xf32>
    %207 = tpu.matmul %147, %206, %cst_169 {dimension_numbers = #tpu.dot_dimension_numbers<[1], [0], [0], [1], [0, 0, 1, 1], [], []>} : vector<32x16xf32>, vector<16x128xf32>, vector<32x128xf32> -> vector<32x128xf32>
    %c8_170 = arith.constant 8 : index
    %c0_171 = arith.constant 0 : index
    %c0_172 = arith.constant 0 : index
    %208 = vector.load %arg4[%c8_170, %c0_171, %c0_172] : memref<9x32x32xf32, #tpu.memory_space<vmem>>, vector<1x32x32xf32>
    %209 = vector.shape_cast %208 : vector<1x32x32xf32> to vector<32x32xf32>
    %cst_173 = arith.constant dense<0.000000e+00> : vector<32x128xf32>
    %210 = tpu.matmul %209, %207, %cst_173 {dimension_numbers = #tpu.dot_dimension_numbers<[1], [0], [0], [1], [0, 0, 1, 1], [], []>} : vector<32x32xf32>, vector<32x128xf32>, vector<32x128xf32> -> vector<32x128xf32>
    %211 = arith.addf %204, %210 : vector<32x128xf32>
    %c0_174 = arith.constant 0 : index
    %c0_175 = arith.constant 0 : index
    %212 = vector.load %arg12[%c0_174, %c0_175] : memref<1x128xf32, #tpu.memory_space<vmem>>, vector<1x128xf32>
    %c0_176 = arith.constant 0 : index
    %c0_177 = arith.constant 0 : index
    %213 = vector.load %arg13[%c0_176, %c0_177] : memref<1x128xf32, #tpu.memory_space<vmem>>, vector<1x128xf32>
    %cst_178 = arith.constant dense<0.000000e+00> : vector<128xf32>
    %214 = vector.multi_reduction <add>, %211, %cst_178 [0] : vector<32x128xf32> to vector<128xf32>
    %215 = vector.shape_cast %214 : vector<128xf32> to vector<1x128xf32>
    %cst_179 = arith.constant 3.125000e-02 : f32
    %216 = vector.broadcast %cst_179 : f32 to vector<1x128xf32>
    %217 = arith.mulf %215, %216 : vector<1x128xf32>
    %218 = arith.mulf %211, %211 : vector<32x128xf32>
    %cst_180 = arith.constant dense<0.000000e+00> : vector<128xf32>
    %219 = vector.multi_reduction <add>, %218, %cst_180 [0] : vector<32x128xf32> to vector<128xf32>
    %220 = vector.shape_cast %219 : vector<128xf32> to vector<1x128xf32>
    %cst_181 = arith.constant 3.125000e-02 : f32
    %221 = vector.broadcast %cst_181 : f32 to vector<1x128xf32>
    %222 = arith.mulf %220, %221 : vector<1x128xf32>
    %223 = arith.mulf %217, %217 : vector<1x128xf32>
    %224 = arith.subf %222, %223 : vector<1x128xf32>
    %225 = vector.broadcast %217 : vector<1x128xf32> to vector<32x128xf32>
    %226 = arith.subf %211, %225 : vector<32x128xf32>
    %cst_182 = arith.constant 9.99999974E-6 : f32
    %227 = vector.broadcast %cst_182 : f32 to vector<1x128xf32>
    %228 = arith.addf %224, %227 : vector<1x128xf32>
    %229 = math.rsqrt %228 : vector<1x128xf32>
    %230 = arith.mulf %212, %229 : vector<1x128xf32>
    %231 = vector.broadcast %230 : vector<1x128xf32> to vector<32x128xf32>
    %232 = arith.mulf %226, %231 : vector<32x128xf32>
    %233 = vector.broadcast %213 : vector<1x128xf32> to vector<32x128xf32>
    %234 = arith.addf %232, %233 : vector<32x128xf32>
    %cst_183 = arith.constant 0.000000e+00 : f32
    %235 = vector.broadcast %cst_183 : f32 to vector<32x128xf32>
    %236 = arith.maximumf %234, %235 : vector<32x128xf32>
    %237 = vector.extract_strided_slice %236 {offsets = [0, 0], sizes = [32, 16], strides = [1, 1]} : vector<32x128xf32> to vector<32x16xf32>
    %c0_184 = arith.constant 0 : index
    %c0_185 = arith.constant 0 : index
    %238 = vector.load %arg14[%c0_184, %c0_185] : memref<16x128xf32, #tpu.memory_space<vmem>>, vector<16x128xf32>
    %cst_186 = arith.constant dense<0.000000e+00> : vector<32x128xf32>
    %239 = tpu.matmul %237, %238, %cst_186 {dimension_numbers = #tpu.dot_dimension_numbers<[1], [0], [0], [1], [0, 0, 1, 1], [], []>} : vector<32x16xf32>, vector<16x128xf32>, vector<32x128xf32> -> vector<32x128xf32>
    %c0_187 = arith.constant 0 : index
    %c0_188 = arith.constant 0 : index
    %240 = vector.load %arg15[%c0_187, %c0_188] : memref<1x128xf32, #tpu.memory_space<vmem>>, vector<1x128xf32>
    %c0_189 = arith.constant 0 : index
    %c0_190 = arith.constant 0 : index
    %241 = vector.load %arg16[%c0_189, %c0_190] : memref<1x128xf32, #tpu.memory_space<vmem>>, vector<1x128xf32>
    %cst_191 = arith.constant dense<0.000000e+00> : vector<128xf32>
    %242 = vector.multi_reduction <add>, %239, %cst_191 [0] : vector<32x128xf32> to vector<128xf32>
    %243 = vector.shape_cast %242 : vector<128xf32> to vector<1x128xf32>
    %cst_192 = arith.constant 3.125000e-02 : f32
    %244 = vector.broadcast %cst_192 : f32 to vector<1x128xf32>
    %245 = arith.mulf %243, %244 : vector<1x128xf32>
    %246 = arith.mulf %239, %239 : vector<32x128xf32>
    %cst_193 = arith.constant dense<0.000000e+00> : vector<128xf32>
    %247 = vector.multi_reduction <add>, %246, %cst_193 [0] : vector<32x128xf32> to vector<128xf32>
    %248 = vector.shape_cast %247 : vector<128xf32> to vector<1x128xf32>
    %cst_194 = arith.constant 3.125000e-02 : f32
    %249 = vector.broadcast %cst_194 : f32 to vector<1x128xf32>
    %250 = arith.mulf %248, %249 : vector<1x128xf32>
    %251 = arith.mulf %245, %245 : vector<1x128xf32>
    %252 = arith.subf %250, %251 : vector<1x128xf32>
    %253 = vector.broadcast %245 : vector<1x128xf32> to vector<32x128xf32>
    %254 = arith.subf %239, %253 : vector<32x128xf32>
    %cst_195 = arith.constant 9.99999974E-6 : f32
    %255 = vector.broadcast %cst_195 : f32 to vector<1x128xf32>
    %256 = arith.addf %252, %255 : vector<1x128xf32>
    %257 = math.rsqrt %256 : vector<1x128xf32>
    %258 = arith.mulf %240, %257 : vector<1x128xf32>
    %259 = vector.broadcast %258 : vector<1x128xf32> to vector<32x128xf32>
    %260 = arith.mulf %254, %259 : vector<32x128xf32>
    %261 = vector.broadcast %241 : vector<1x128xf32> to vector<32x128xf32>
    %262 = arith.addf %260, %261 : vector<32x128xf32>
    %263 = arith.addf %144, %262 : vector<32x128xf32>
    %c0_196 = arith.constant 0 : index
    %c0_197 = arith.constant 0 : index
    %264 = vector.load %arg17[%c0_196, %c0_197] : memref<32x128xf32, #tpu.memory_space<vmem>>, vector<32x128xf32>
    tpu.vector_store %arg17[%c0_196, %c0_197], %263 {strides = array<i32>} : memref<32x128xf32, #tpu.memory_space<vmem>>, vector<32x128xf32>,
    return
  }
}

</mosaic_0001>

<bundles_post_ra>
// kernel: oord_encoder_forward.2
= control target key start
LH: loop header
LB: loop body
LE: loop exit
PB: predicated region body
PF: predicated region fallthrough
CT: control target
= control target key end

     0   :  { %vm41_vm0 = vcmask 523264   ;;  %s768_s1 = inlined_call_operand.vmem [shape: f32[64,128], index: 1, kind: input, shape index: {}]   ;;  %s769_s0 = inlined_call_operand.vmem [shape: f32[128,64], index: 0, kind: input, shape index: {}]   ;;  %s770_s2 = inlined_call_operand.vmem [shape: f32[1,128], index: 2, kind: input, shape index: {}]   ;;  %s771_s3 = inlined_call_operand.vmem [shape: f32[1,128], index: 3, kind: input, shape index: {}]   ;;  %s772_s4 = inlined_call_operand.vmem [shape: f32[128,128], index: 4, kind: output, shape index: {}]  }
   0x1   :  { %v33_v0 = vld [vmem:[%s768_s1] sm:$0xff]  ;;  %v34_v1 = vld [vmem:[%s768_s1 + $0x8] sm:$0xff]  ;;  %v35_v2 = vld [vmem:[%s768_s1 + $0x10] sm:$0xff] }
   0x2   :  { %v479_v3 = vpack.c.bf16 %v34_v1, %v33_v0  ;;  %v36_v4 = vld [vmem:[%s768_s1 + $0x18] sm:$0xff]  ;;  %v37_v6 = vld [vmem:[%s768_s1 + $0x20] sm:$0xff]  ;;  %v38_v7 = vld [vmem:[%s768_s1 + $0x28] sm:$0xff] }
   0x3   :  { %v483_v5 = vpack.c.bf16 %v36_v4, %v35_v2  ;;  %v17_v8 = vld [vmem:[%s769_s0] sm:$0xff]  ;;  %v487_v9 = vpack.c.bf16 %v38_v7, %v37_v6  ;;  %v39_v11 = vld [vmem:[%s768_s1 + $0x30] sm:$0xff]  ;;  %v40_v12 = vld [vmem:[%s768_s1 + $0x38] sm:$0xff] }
   0x4   :  { %480 = vmatprep.subr.bf16.mxu0 %v479_v3  ;;  %495 = vmatprep.subr.bf16.mxu1 %v479_v3  ;;  %v25_v10 = vld [vmem:[%s769_s0 + $0x40] sm:$0xff]  ;;  %v491_v13 = vpack.c.bf16 %v40_v12, %v39_v11  ;;  %v18_v14 = vld [vmem:[%s769_s0 + $0x8] sm:$0xff]  ;;  %v19_v15 = vld [vmem:[%s769_s0 + $0x10] sm:$0xff] }
   0x5   :  { %482 = vmatpush3.bf16.msra.mxu0 %v479_v3  ;;  %455 = vmatprep.mubr.msk.f32.mxu0 %vm41_vm0, %v17_v8  ;;  %v26_v16 = vld [vmem:[%s769_s0 + $0x48] sm:$0xff]  ;;  %v27_v17 = vld [vmem:[%s769_s0 + $0x50] sm:$0xff]  ;;  %v20_v18 = vld [vmem:[%s769_s0 + $0x18] sm:$0xff] }
   0x6   :  { %484 = vmatprep.subr.bf16.mxu0 %v483_v5  ;;  %499 = vmatpush3.bf16.msra.mxu1 %v479_v3  ;;  %v21_v19 = vld [vmem:[%s769_s0 + $0x20] sm:$0xff]  ;;  %v28_v20 = vld [vmem:[%s769_s0 + $0x58] sm:$0xff]  ;;  %v22_v22 = vld [vmem:[%s769_s0 + $0x28] sm:$0xff] }
   0x7   :  { %496 = vmatprep.subr.bf16.mxu1 %v483_v5  ;;  %467 = vmatprep.mubr.msk.f32.mxu1 %vm41_vm0, %v25_v10  ;;  %v29_v21 = vld [vmem:[%s769_s0 + $0x60] sm:$0xff]  ;;  %v23_v23 = vld [vmem:[%s769_s0 + $0x30] sm:$0xff]  ;;  %v30_v24 = vld [vmem:[%s769_s0 + $0x68] sm:$0xff] }
   0x8   :  { %v31_v25 = vld [vmem:[%s769_s0 + $0x70] sm:$0xff]  ;;  %v24_v26 = vld [vmem:[%s769_s0 + $0x38] sm:$0xff] }
   0x9   :  { %486 = vmatpush3.bf16.msra.mxu0 %v483_v5  ;;  %v32_v27 = vld [vmem:[%s769_s0 + $0x78] sm:$0xff] }
   0xa   :  { %488 = vmatprep.subr.bf16.mxu0 %v487_v9  ;;  %500 = vmatpush3.bf16.msra.mxu1 %v483_v5 }
   0xb   :  { %497 = vmatprep.subr.bf16.mxu1 %v487_v9 }
   0xd   :  { %490 = vmatpush3.bf16.msra.mxu0 %v487_v9 }
   0xe   :  { %492 = vmatprep.subr.bf16.mxu0 %v491_v13  ;;  %501 = vmatpush3.bf16.msra.mxu1 %v487_v9 }
   0xf   :  { %498 = vmatprep.subr.bf16.mxu1 %v491_v13 }
  0x11   :  { %494 = vmatpush3.bf16.msra.mxu0 %v491_v13 }
  0x12   :  { %502 = vmatpush3.bf16.msra.mxu1 %v491_v13 }
  0x14   :  { %456 = vmatmul.mubr.msk.f32.vlgmr.msra.gmra.mrb[0].mxu0 %vm41_vm0, %v18_v14 }
  0x15   :  { %458 = vmatprep.mubr.msk.f32.mxu0 %vm41_vm0, %v19_v15  ;;  %468 = vmatmul.mubr.msk.f32.vlgmr.msra.gmra.mrb[0].mxu1 %vm41_vm0, %v26_v16 }
  0x16   :  { %470 = vmatprep.mubr.msk.f32.mxu1 %vm41_vm0, %v27_v17 }
  0x18   :  { %459 = vmatmul.mubr.msk.f32.gmra.mrb[2].mxu0 %vm41_vm0, %v20_v18 }
  0x19   :  { %461 = vmatprep.mubr.msk.f32.mxu0 %vm41_vm0, %v21_v19  ;;  %471 = vmatmul.mubr.msk.f32.gmra.mrb[2].mxu1 %vm41_vm0, %v28_v20 }
  0x1a   :  { %473 = vmatprep.mubr.msk.f32.mxu1 %vm41_vm0, %v29_v21 }
  0x1c   :  { %462 = vmatmul.mubr.msk.f32.gmra.mrb[4].mxu0 %vm41_vm0, %v22_v22 }
  0x1d   :  { %464 = vmatprep.mubr.msk.f32.mxu0 %vm41_vm0, %v23_v23  ;;  %474 = vmatmul.mubr.msk.f32.gmra.mrb[4].mxu1 %vm41_vm0, %v30_v24 }
  0x1e   :  { %476 = vmatprep.mubr.msk.f32.mxu1 %vm41_vm0, %v31_v25 }
  0x20   :  { %465 = vmatmul.mubr.msk.f32.gmra.mrb[6].mxu0 %vm41_vm0, %v24_v26 }
  0x21   :  { %477 = vmatmul.mubr.msk.f32.gmra.mrb[6].mxu1 %vm41_vm0, %v32_v27 }
  0xe7   :  { %v618_v28 = vpop.f32.mrb[0].mxu0 }
  0xe8   :  { %v260_v29 = vmul.f32 %v618_v28, %v618_v28  ;;  %v622_v30 = vpop.f32.mrb[1].mxu0  ;;  %v624_v31 = vpop.f32.mrb[0].mxu1 }
  0xe9   :  { %v237_v32 = vadd.f32 %v618_v28, %v622_v30  ;;  %v259_v33 = vmul.f32 %v622_v30, %v622_v30  ;;  %v630_v34 = vpop.f32.mrb[1].mxu1  ;;  %v268_v4 = vmul.f32 %v624_v31, %v624_v31 }
  0xea   :  { %v267_v1 = vmul.f32 %v630_v34, %v630_v34 }
  0xeb   :  { %v275_v35 = vadd.f32 %v260_v29, %v259_v33  ;;  %v632_v36 = vpop.f32.mrb[2].mxu0 }
  0xec   :  { %v634_v37 = vpop.f32.mrb[3].mxu0  ;;  %v636_v38 = vpop.f32.mrb[2].mxu1  ;;  %v262_v42 = vmul.f32 %v632_v36, %v632_v36 }
  0xed   :  { %v238_v39 = vadd.f32 %v237_v32, %v634_v37  ;;  %v261_v40 = vmul.f32 %v634_v37, %v634_v37  ;;  %v641_v41 = vpop.f32.mrb[3].mxu1  ;;  %v270_v10 = vmul.f32 %v636_v38, %v636_v38 }
  0xee   :  { %v269_v7 = vmul.f32 %v641_v41, %v641_v41 }
  0xef   :  { %v276_v43 = vadd.f32 %v275_v35, %v261_v40  ;;  %v645_v44 = vpop.f32.mrb[4].mxu0  ;;  %v239_v45 = vadd.f32 %v632_v36, %v238_v39 }
  0xf0   :  { %v648_v46 = vpop.f32.mrb[5].mxu0  ;;  %v650_v47 = vpop.f32.mrb[4].mxu1  ;;  %v264_v52 = vmul.f32 %v645_v44, %v645_v44 }
  0xf1   :  { %v240_v48 = vadd.f32 %v239_v45, %v648_v46  ;;  %v263_v49 = vmul.f32 %v648_v46, %v648_v46  ;;  %v277_v50 = vadd.f32 %v276_v43, %v262_v42  ;;  %v655_v51 = vpop.f32.mrb[5].mxu1  ;;  %v272_v16 = vmul.f32 %v650_v47, %v650_v47 }
  0xf2   :  { %v271_v13 = vmul.f32 %v655_v51, %v655_v51 }
  0xf3   :  { %v278_v53 = vadd.f32 %v277_v50, %v263_v49  ;;  %v659_v54 = vpop.f32.mrb[6].mxu0  ;;  %v241_v55 = vadd.f32 %v645_v44, %v240_v48 }
  0xf4   :  { %v662_v56 = vpop.f32.mrb[7].mxu0  ;;  %v664_v57 = vpop.f32.mrb[6].mxu1  ;;  %v266_v62 = vmul.f32 %v659_v54, %v659_v54 }
  0xf5   :  { %v242_v58 = vadd.f32 %v241_v55, %v662_v56  ;;  %v265_v59 = vmul.f32 %v662_v56, %v662_v56  ;;  %v279_v60 = vadd.f32 %v278_v53, %v264_v52  ;;  %v669_v61 = vpop.f32.mrb[7].mxu1  ;;  %v274_v22 = vmul.f32 %v664_v57, %v664_v57 }
  0xf6   :  { %v273_v19 = vmul.f32 %v669_v61, %v669_v61 }
  0xf7   :  { %v243_v63 = vadd.f32 %v659_v54, %v242_v58  ;;  %v280_v0 = vadd.f32 %v279_v60, %v265_v59 }
  0xf9   :  { %v281_v2 = vadd.f32 %v280_v0, %v266_v62  ;;  %v244_v3 = vadd.f32 %v243_v63, %v630_v34 }
  0xfb   :  { %v282_v5 = vadd.f32 %v281_v2, %v267_v1  ;;  %v245_v6 = vadd.f32 %v624_v31, %v244_v3 }
  0xfd   :  { %v246_v8 = vadd.f32 %v245_v6, %v641_v41  ;;  %v283_v9 = vadd.f32 %v282_v5, %v268_v4 }
  0xff   :  { %v284_v11 = vadd.f32 %v283_v9, %v269_v7  ;;  %v247_v12 = vadd.f32 %v636_v38, %v246_v8 }
 0x101   :  { %v248_v14 = vadd.f32 %v247_v12, %v655_v51  ;;  %v285_v15 = vadd.f32 %v284_v11, %v270_v10 }
 0x103   :  { %v286_v17 = vadd.f32 %v285_v15, %v271_v13  ;;  %v249_v18 = vadd.f32 %v650_v47, %v248_v14 }
 0x105   :  { %v250_v20 = vadd.f32 %v249_v18, %v669_v61  ;;  %v287_v21 = vadd.f32 %v286_v17, %v272_v16 }
 0x107   :  { %v251_v23 = vadd.f32 %v664_v57, %v250_v20  ;;  %v288_v24 = vadd.f32 %v287_v21, %v273_v19 }
 0x109   :  { %v252_v25 = vrot.slane %v251_v23, 4  ;;  %v289_v26 = vadd.f32 %v288_v24, %v274_v22 }
 0x10b   :  { %v253_v27 = vadd.f32 %v252_v25, %v251_v23  ;;  %v290_v29 = vrot.slane %v289_v26, 4 }
 0x10d   :  { %v254_v32 = vrot.slane %v253_v27, 2  ;;  %v291_v33 = vadd.f32 %v290_v29, %v289_v26 }
 0x10f   :  { %v255_v35 = vadd.f32 %v254_v32, %v253_v27  ;;  %v292_v39 = vrot.slane %v291_v33, 2 }
 0x111   :  { %v256_v40 = vrot.slane %v255_v35, 1  ;;  %v293_v42 = vadd.f32 %v292_v39, %v291_v33 }
 0x113   :  { %v257_v43 = vadd.f32 %v256_v40, %v255_v35  ;;  %v294_v45 = vrot.slane %v293_v42, 1 }
 0x115   :  { %v258_v48 = vmul.f32 0.0078125, %v257_v43  ;;  %v295_v49 = vadd.f32 %v294_v45, %v293_v42 }
 0x117   :  { %v296_v50 = vmul.f32 0.0078125, %v295_v49  ;;  %v297_v52 = vmul.f32 %v258_v48, %v258_v48  ;;  %v299_v53 = vsub.f32 %v622_v30, %v258_v48  ;;  %v300_v55 = vsub.f32 %v618_v28, %v258_v48 }
 0x118   :  { %v301_v58 = vsub.f32 %v634_v37, %v258_v48  ;;  %v302_v59 = vsub.f32 %v632_v36, %v258_v48  ;;  %v303_v60 = vsub.f32 %v648_v46, %v258_v48  ;;  %v304_v62 = vsub.f32 %v645_v44, %v258_v48 }
 0x119   :  { %v298_v63 = vsub.f32 %v296_v50, %v297_v52  ;;  %v305_v0 = vsub.f32 %v662_v56, %v258_v48  ;;  %v306_v1 = vsub.f32 %v659_v54, %v258_v48  ;;  %v307_v2 = vsub.f32 %v630_v34, %v258_v48 }
 0x11a   :  { %v308_v3 = vsub.f32 %v624_v31, %v258_v48  ;;  %v309_v30 = vsub.f32 %v641_v41, %v258_v48  ;;  %v310_v28 = vsub.f32 %v636_v38, %v258_v48  ;;  %v311_v37 = vsub.f32 %v655_v51, %v258_v48  ;;  %v235_v31 = vld [vmem:[%s770_s2] sm:$0x1] }
 0x11b   :  { %v312_v36 = vsub.f32 %v650_v47, %v258_v48  ;;  %v313_v46 = vsub.f32 %v669_v61, %v258_v48  ;;  %v314_v44 = vsub.f32 %v664_v57, %v258_v48  ;;  %v315_v4 = vadd.f32 1e-05, %v298_v63  ;;  %v414_v57 = vld [vmem:[%s771_s3] ss:$0 sm:$0xff] }
 0x11c   :  { %v319_v56 = vlaneseq }
 0x11d   :  { %503 = vrsqrt.f32 %v315_v4 }
 0x11e   :  { %v320_v54 = vshrl.u32 %v319_v56, 7 }
 0x120   :  { %v321_v34 = vsub.s32 0, %v320_v54 }
 0x127   :  { %v504_v41 = vpop.eup %503 }
 0x128   :  { %v317_v5 = vmul.f32 %v504_v41, %v235_v31 }
 0x12a   :  { %v322_v38 = vrot.slane %v317_v5, %v321_v34 }
 0x12c   :  { %v324_v6 = vmul.f32 %v322_v38, %v299_v53  ;;  %v325_v51 = vmul.f32 %v322_v38, %v300_v55  ;;  %v326_v7 = vmul.f32 %v322_v38, %v301_v58  ;;  %v327_v47 = vmul.f32 %v322_v38, %v302_v59 }
 0x12d   :  { %v328_v61 = vmul.f32 %v322_v38, %v303_v60  ;;  %v329_v8 = vmul.f32 %v322_v38, %v304_v62  ;;  %v330_v9 = vmul.f32 %v322_v38, %v305_v0  ;;  %v331_v10 = vmul.f32 %v322_v38, %v306_v1 }
 0x12e   :  { %v332_v11 = vmul.f32 %v322_v38, %v307_v2  ;;  %v333_v12 = vmul.f32 %v322_v38, %v308_v3  ;;  %v334_v13 = vmul.f32 %v322_v38, %v309_v30  ;;  %v335_v14 = vmul.f32 %v322_v38, %v310_v28 }
 0x12f   :  { %v336_v15 = vmul.f32 %v322_v38, %v311_v37  ;;  %v337_v16 = vmul.f32 %v322_v38, %v312_v36  ;;  %v338_v17 = vmul.f32 %v322_v38, %v313_v46  ;;  %v339_v18 = vmul.f32 %v322_v38, %v314_v44 }
 0x130   :  { %v346_v19 = vadd.f32 %v414_v57, %v324_v6  ;;  %v347_v20 = vadd.f32 %v414_v57, %v325_v51  ;;  %v348_v21 = vadd.f32 %v414_v57, %v326_v7  ;;  %v349_v22 = vadd.f32 %v414_v57, %v327_v47 }
 0x131   :  { %v350_v23 = vadd.f32 %v414_v57, %v328_v61  ;;  %v351_v24 = vadd.f32 %v414_v57, %v329_v8  ;;  %v352_v25 = vadd.f32 %v414_v57, %v330_v9  ;;  %v353_v26 = vadd.f32 %v414_v57, %v331_v10 }
 0x132   :  { %v354_v27 = vadd.f32 %v414_v57, %v332_v11  ;;  %v355_v29 = vadd.f32 %v414_v57, %v333_v12  ;;  %v356_v32 = vadd.f32 %v414_v57, %v334_v13  ;;  %v357_v33 = vadd.f32 %v414_v57, %v335_v14 }
 0x133   :  { %v358_v35 = vadd.f32 %v414_v57, %v336_v15  ;;  %v359_v39 = vadd.f32 %v414_v57, %v337_v16  ;;  %v360_v40 = vadd.f32 %v414_v57, %v338_v17  ;;  %v361_v42 = vadd.f32 %v414_v57, %v339_v18 }
 0x134   :  { %v362_v43 = vmax.f32 %v346_v19, 0.0  ;;  %v363_v45 = vmax.f32 %v347_v20, 0.0  ;;  %v364_v48 = vmax.f32 %v348_v21, 0.0  ;;  %v365_v49 = vmax.f32 %v349_v22, 0.0 }
 0x135   :  { %v366_v50 = vmax.f32 %v350_v23, 0.0  ;;  %v367_v52 = vmax.f32 %v351_v24, 0.0  ;;  %v368_v53 = vmax.f32 %v352_v25, 0.0  ;;  %v369_v55 = vmax.f32 %v353_v26, 0.0 }
 0x136   :  { %v370_v58 = vmax.f32 %v354_v27, 0.0  ;;  %v371_v59 = vmax.f32 %v355_v29, 0.0  ;;  %v372_v60 = vmax.f32 %v356_v32, 0.0  ;;  %v373_v62 = vmax.f32 %v357_v33, 0.0  ;;  %378 = vst [vmem:[%s772_s4] sm:$0xff] %v362_v43  ;;  %379 = vst [vmem:[%s772_s4 + $0x8] sm:$0xff] %v363_v45 }
 0x137   :  { %380 = vst [vmem:[%s772_s4 + $0x10] sm:$0xff] %v364_v48  ;;  %381 = vst [vmem:[%s772_s4 + $0x18] sm:$0xff] %v365_v49  ;;  %v374_v63 = vmax.f32 %v358_v35, 0.0  ;;  %v375_v0 = vmax.f32 %v359_v39, 0.0  ;;  %v376_v1 = vmax.f32 %v360_v40, 0.0  ;;  %v377_v2 = vmax.f32 %v361_v42, 0.0 }
 0x138   :  { %382 = vst [vmem:[%s772_s4 + $0x20] sm:$0xff] %v366_v50  ;;  %383 = vst [vmem:[%s772_s4 + $0x28] sm:$0xff] %v367_v52 }
 0x139   :  { %384 = vst [vmem:[%s772_s4 + $0x30] sm:$0xff] %v368_v53  ;;  %385 = vst [vmem:[%s772_s4 + $0x38] sm:$0xff] %v369_v55 }
 0x13a   :  { %386 = vst [vmem:[%s772_s4 + $0x40] sm:$0xff] %v370_v58  ;;  %387 = vst [vmem:[%s772_s4 + $0x48] sm:$0xff] %v371_v59 }
 0x13b   :  { %388 = vst [vmem:[%s772_s4 + $0x50] sm:$0xff] %v372_v60  ;;  %389 = vst [vmem:[%s772_s4 + $0x58] sm:$0xff] %v373_v62 }
 0x13c   :  { %390 = vst [vmem:[%s772_s4 + $0x60] sm:$0xff] %v374_v63  ;;  %391 = vst [vmem:[%s772_s4 + $0x68] sm:$0xff] %v375_v0 }
 0x13d   :  { %392 = vst [vmem:[%s772_s4 + $0x70] sm:$0xff] %v376_v1  ;;  %393 = vst [vmem:[%s772_s4 + $0x78] sm:$0xff] %v377_v2 }

// kernel: oord_encoder_forward.3
= control target key start
LH: loop header
LB: loop body
LE: loop exit
PB: predicated region body
PF: predicated region fallthrough
CT: control target
= control target key end

     0   :  { %s6596_s0 = inlined_call_operand.vmem [shape: f32[32,512], index: 0, kind: input, shape index: {}]   ;;  %s6597_s1 = inlined_call_operand.vmem [shape: f32[512,128], index: 1, kind: input, shape index: {}]   ;;  %s6598_s2 = inlined_call_operand.vmem [shape: f32[1,128], index: 2, kind: input, shape index: {}]   ;;  %s6599_s3 = inlined_call_operand.vmem [shape: f32[1,128], index: 3, kind: input, shape index: {}]   ;;  %s6600_s4 = inlined_call_operand.vmem [shape: f32[9,32,32], index: 4, kind: input, shape index: {}]   ;;  %s6601_s5 = inlined_call_operand.vmem [shape: f32[9,16,128], index: 5, kind: input, shape index: {}]   ;;  %s6602_s6 = inlined_call_operand.vmem [shape: f32[1,128], index: 6, kind: input, shape index: {}]   ;;  %s6603_s7 = inlined_call_operand.vmem [shape: f32[1,128], index: 7, kind: input, shape index: {}]   ;;  %s6604_s8 = inlined_call_operand.vmem [shape: f32[16,128], index: 8, kind: input, shape index: {}]   ;;  %s6605_s9 = inlined_call_operand.vmem [shape: f32[1,128], index: 9, kind: input, shape index: {}]   ;;  %s6606_s10 = inlined_call_operand.vmem [shape: f32[1,128], index: 10, kind: input, shape index: {}]   ;;  %s6607_s11 = inlined_call_operand.vmem [shape: f32[9,16,128], index: 11, kind: input, shape index: {}]   ;;  %s6608_s12 = inlined_call_operand.vmem [shape: f32[1,128], index: 12, kind: input, shape index: {}]   ;;  %s6609_s13 = inlined_call_operand.vmem [shape: f32[1,128], index: 13, kind: input, shape index: {}]   ;;  %s6610_s14 = inlined_call_operand.vmem [shape: f32[16,128], index: 14, kind: input, shape index: {}]   ;;  %s6611_s15 = inlined_call_operand.vmem [shape: f32[1,128], index: 15, kind: input, shape index: {}]   ;;  %s6612_s16 = inlined_call_operand.vmem [shape: f32[1,128], index: 16, kind: input, shape index: {}]   ;;  %s6613_s17 = inlined_call_operand.hbm [shape: f32[32,128], index: 17, kind: output, shape index: {}]  }
   0x1   :  { %6622 = sst [smem:[#allocation11_spill]] %s6596_s0 }
   0x2   :  { %6623 = sst [smem:[#allocation12_spill]] %s6597_s1 }
   0x3   :  { %s6624_s26 = sld [smem:[#allocation12_spill]]  ;;  %s6625_s24 = sld [smem:[#allocation11_spill]] }
   0x9   :  { %v89_v0 = vld [vmem:[%s6624_s26 + $0x80] sm:$0xff]  ;;  %v90_v1 = vld [vmem:[%s6624_s26 + $0x88] sm:$0xff]  ;;  %v91_v11 = vld [vmem:[%s6624_s26 + $0x90] sm:$0xff] }
   0xa   :  { %v121_v2 = vld [vmem:[%s6624_s26 + $0x180] sm:$0xff]  ;;  %v5195_v3 = vpack.c.bf16 %v90_v1, %v89_v0  ;;  %v122_v4 = vld [vmem:[%s6624_s26 + $0x188] sm:$0xff]  ;;  %v92_v13 = vld [vmem:[%s6624_s26 + $0x98] sm:$0xff] }
   0xb   :  { %v73_v5 = vld [vmem:[%s6624_s26] sm:$0xff]  ;;  %v74_v6 = vld [vmem:[%s6624_s26 + $0x8] sm:$0xff]  ;;  %v5227_v7 = vpack.c.bf16 %v122_v4, %v121_v2  ;;  %v123_v14 = vld [vmem:[%s6624_s26 + $0x190] sm:$0xff]  ;;  %v5199_v16 = vpack.c.bf16 %v92_v13, %v91_v11 }
   0xc   :  { %v5197_v8 = vpack.c.bf16 %v74_v6, %v73_v5  ;;  %v105_v9 = vld [vmem:[%s6624_s26 + $0x100] sm:$0xff]  ;;  %v106_v10 = vld [vmem:[%s6624_s26 + $0x108] sm:$0xff]  ;;  %5196 = vmatprep.subr.bf16.mxu0 %v5195_v3  ;;  %v124_v15 = vld [vmem:[%s6624_s26 + $0x198] sm:$0xff] }
   0xd   :  { %v5229_v12 = vpack.c.bf16 %v106_v10, %v105_v9  ;;  %5228 = vmatprep.subr.bf16.mxu1 %v5227_v7  ;;  %v5231_v17 = vpack.c.bf16 %v124_v15, %v123_v14  ;;  %v75_v18 = vld [vmem:[%s6624_s26 + $0x10] sm:$0xff]  ;;  %v76_v19 = vld [vmem:[%s6624_s26 + $0x18] sm:$0xff]  ;;  %v93_v23 = vld [vmem:[%s6624_s26 + $0xa0] sm:$0xff] }
   0xe   :  { %5198 = vmatpush3.bf16.msra.mxu0 %v5197_v8  ;;  %v107_v20 = vld [vmem:[%s6624_s26 + $0x110] sm:$0xff]  ;;  %v5201_v21 = vpack.c.bf16 %v76_v19, %v75_v18  ;;  %v108_v22 = vld [vmem:[%s6624_s26 + $0x118] sm:$0xff]  ;;  %v94_v24 = vld [vmem:[%s6624_s26 + $0xa8] sm:$0xff] }
   0xf   :  { %5230 = vmatpush3.bf16.msra.mxu1 %v5229_v12  ;;  %5200 = vmatprep.subr.bf16.mxu0 %v5199_v16  ;;  %v5233_v25 = vpack.c.bf16 %v108_v22, %v107_v20  ;;  %v5203_v26 = vpack.c.bf16 %v94_v24, %v93_v23  ;;  %v125_v27 = vld [vmem:[%s6624_s26 + $0x1a0] sm:$0xff]  ;;  %v126_v28 = vld [vmem:[%s6624_s26 + $0x1a8] sm:$0xff]  ;;  %v95_v35 = vld [vmem:[%s6624_s26 + $0xb0] sm:$0xff] }
  0x10   :  { %5232 = vmatprep.subr.bf16.mxu1 %v5231_v17  ;;  %v77_v29 = vld [vmem:[%s6624_s26 + $0x20] sm:$0xff]  ;;  %v5235_v30 = vpack.c.bf16 %v126_v28, %v125_v27  ;;  %v78_v31 = vld [vmem:[%s6624_s26 + $0x28] sm:$0xff]  ;;  %v96_v36 = vld [vmem:[%s6624_s26 + $0xb8] sm:$0xff] }
  0x11   :  { %v109_v32 = vld [vmem:[%s6624_s26 + $0x120] sm:$0xff]  ;;  %v110_v33 = vld [vmem:[%s6624_s26 + $0x128] sm:$0xff]  ;;  %v5205_v34 = vpack.c.bf16 %v78_v31, %v77_v29  ;;  %v127_v37 = vld [vmem:[%s6624_s26 + $0x1b0] sm:$0xff]  ;;  %v5207_v39 = vpack.c.bf16 %v96_v36, %v95_v35 }
  0x12   :  { %5202 = vmatpush3.bf16.msra.mxu0 %v5201_v21  ;;  %v5237_v38 = vpack.c.bf16 %v110_v33, %v109_v32  ;;  %v128_v40 = vld [vmem:[%s6624_s26 + $0x1b8] sm:$0xff]  ;;  %v79_v41 = vld [vmem:[%s6624_s26 + $0x30] sm:$0xff]  ;;  %v97_v46 = vld [vmem:[%s6624_s26 + $0xc0] sm:$0xff] }
  0x13   :  { %5234 = vmatpush3.bf16.msra.mxu1 %v5233_v25  ;;  %5204 = vmatprep.subr.bf16.mxu0 %v5203_v26  ;;  %v80_v42 = vld [vmem:[%s6624_s26 + $0x38] sm:$0xff]  ;;  %v5239_v43 = vpack.c.bf16 %v128_v40, %v127_v37  ;;  %v111_v44 = vld [vmem:[%s6624_s26 + $0x130] sm:$0xff]  ;;  %v98_v47 = vld [vmem:[%s6624_s26 + $0xc8] sm:$0xff] }
  0x14   :  { %5236 = vmatprep.subr.bf16.mxu1 %v5235_v30  ;;  %v112_v45 = vld [vmem:[%s6624_s26 + $0x138] sm:$0xff]  ;;  %v129_v48 = vld [vmem:[%s6624_s26 + $0x1c0] sm:$0xff]  ;;  %v130_v49 = vld [vmem:[%s6624_s26 + $0x1c8] sm:$0xff]  ;;  %v5209_v50 = vpack.c.bf16 %v80_v42, %v79_v41  ;;  %v5211_v52 = vpack.c.bf16 %v98_v47, %v97_v46 }
  0x15   :  { %v5241_v51 = vpack.c.bf16 %v112_v45, %v111_v44  ;;  %v81_v53 = vld [vmem:[%s6624_s26 + $0x40] sm:$0xff]  ;;  %v82_v54 = vld [vmem:[%s6624_s26 + $0x48] sm:$0xff]  ;;  %v5243_v56 = vpack.c.bf16 %v130_v49, %v129_v48  ;;  %v99_v58 = vld [vmem:[%s6624_s26 + $0xd0] sm:$0xff] }
  0x16   :  { %5206 = vmatpush3.bf16.msra.mxu0 %v5205_v34  ;;  %v113_v55 = vld [vmem:[%s6624_s26 + $0x140] sm:$0xff]  ;;  %v114_v57 = vld [vmem:[%s6624_s26 + $0x148] sm:$0xff]  ;;  %v100_v59 = vld [vmem:[%s6624_s26 + $0xd8] sm:$0xff]  ;;  %v5213_v62 = vpack.c.bf16 %v82_v54, %v81_v53 }
  0x17   :  { %5238 = vmatpush3.bf16.msra.mxu1 %v5237_v38  ;;  %5208 = vmatprep.subr.bf16.mxu0 %v5207_v39  ;;  %v131_v60 = vld [vmem:[%s6624_s26 + $0x1d0] sm:$0xff]  ;;  %v132_v61 = vld [vmem:[%s6624_s26 + $0x1d8] sm:$0xff]  ;;  %v5245_v63 = vpack.c.bf16 %v114_v57, %v113_v55  ;;  %v5215_v0 = vpack.c.bf16 %v100_v59, %v99_v58  ;;  %v101_v6 = vld [vmem:[%s6624_s26 + $0xe0] sm:$0xff] }
  0x18   :  { %5240 = vmatprep.subr.bf16.mxu1 %v5239_v43  ;;  %v83_v1 = vld [vmem:[%s6624_s26 + $0x50] sm:$0xff]  ;;  %v84_v2 = vld [vmem:[%s6624_s26 + $0x58] sm:$0xff]  ;;  %v5247_v4 = vpack.c.bf16 %v132_v61, %v131_v60  ;;  %v102_v7 = vld [vmem:[%s6624_s26 + $0xe8] sm:$0xff] }
  0x19   :  { %v115_v3 = vld [vmem:[%s6624_s26 + $0x150] sm:$0xff]  ;;  %v116_v5 = vld [vmem:[%s6624_s26 + $0x158] sm:$0xff]  ;;  %v133_v8 = vld [vmem:[%s6624_s26 + $0x1e0] sm:$0xff]  ;;  %v5217_v10 = vpack.c.bf16 %v84_v2, %v83_v1  ;;  %v5219_v14 = vpack.c.bf16 %v102_v7, %v101_v6 }
  0x1a   :  { %5210 = vmatpush3.bf16.msra.mxu0 %v5209_v50  ;;  %v134_v9 = vld [vmem:[%s6624_s26 + $0x1e8] sm:$0xff]  ;;  %v85_v11 = vld [vmem:[%s6624_s26 + $0x60] sm:$0xff]  ;;  %v5249_v13 = vpack.c.bf16 %v116_v5, %v115_v3  ;;  %v60_v17 = vld [vmem:[%s6625_s24 + $0x18] sm:$0xff] }
  0x1b   :  { %5242 = vmatpush3.bf16.msra.mxu1 %v5241_v51  ;;  %5212 = vmatprep.subr.bf16.mxu0 %v5211_v52  ;;  %v86_v12 = vld [vmem:[%s6624_s26 + $0x68] sm:$0xff]  ;;  %v117_v15 = vld [vmem:[%s6624_s26 + $0x160] sm:$0xff]  ;;  %v5251_v18 = vpack.c.bf16 %v134_v9, %v133_v8  ;;  %v103_v20 = vld [vmem:[%s6624_s26 + $0xf0] sm:$0xff] }
  0x1c   :  { %5244 = vmatprep.subr.bf16.mxu1 %v5243_v56  ;;  %v58_v16 = vld [vmem:[%s6625_s24 + $0x8] sm:$0xff]  ;;  %v104_v21 = vld [vmem:[%s6624_s26 + $0xf8] sm:$0xff]  ;;  %v135_v22 = vld [vmem:[%s6624_s26 + $0x1f0] sm:$0xff]  ;;  %286 = vmatprep.mubr.f32.mxu1 %v60_v17  ;;  %v5221_v24 = vpack.c.bf16 %v86_v12, %v85_v11 }
  0x1d   :  { %v118_v19 = vld [vmem:[%s6624_s26 + $0x168] sm:$0xff]  ;;  %201 = vmatprep.mubr.f32.mxu0 %v58_v16  ;;  %v136_v23 = vld [vmem:[%s6624_s26 + $0x1f8] sm:$0xff]  ;;  %v5223_v26 = vpack.c.bf16 %v104_v21, %v103_v20  ;;  %v87_v27 = vld [vmem:[%s6624_s26 + $0x70] sm:$0xff] }
  0x1e   :  { %5214 = vmatpush3.bf16.msra.mxu0 %v5213_v62  ;;  %v5253_v25 = vpack.c.bf16 %v118_v19, %v117_v15  ;;  %v88_v28 = vld [vmem:[%s6624_s26 + $0x78] sm:$0xff]  ;;  %v5255_v29 = vpack.c.bf16 %v136_v23, %v135_v22  ;;  %v119_v30 = vld [vmem:[%s6624_s26 + $0x170] sm:$0xff] }
  0x1f   :  { %5246 = vmatpush3.bf16.msra.mxu1 %v5245_v63  ;;  %5216 = vmatprep.subr.bf16.mxu0 %v5215_v0  ;;  %v120_v31 = vld [vmem:[%s6624_s26 + $0x178] sm:$0xff] }
  0x20   :  { %5248 = vmatprep.subr.bf16.mxu1 %v5247_v4 }
  0x22   :  { %5218 = vmatpush3.bf16.msra.mxu0 %v5217_v10 }
  0x23   :  { %5250 = vmatpush3.bf16.msra.mxu1 %v5249_v13  ;;  %5220 = vmatprep.subr.bf16.mxu0 %v5219_v14 }
  0x24   :  { %5252 = vmatprep.subr.bf16.mxu1 %v5251_v18 }
  0x25   :  { %22 = vsyncpa [#allocation3], 0  ;;  %v5225_v32 = vpack.c.bf16 %v88_v28, %v87_v27  ;;  %v5257_v33 = vpack.c.bf16 %v120_v31, %v119_v30  ;;  %v57_v34 = vld [vmem:[%s6625_s24] sm:$0xff]  ;;  %v59_v35 = vld [vmem:[%s6625_s24 + $0x10] sm:$0xff]  ;;  %vm368_vm0 = vcmask 130048   ;;  %vm563_vm1 = vcmask 261120  }
  0x26   :  { %5222 = vmatpush3.bf16.msra.mxu0 %v5221_v24  ;;  %v62_v36 = vld [vmem:[%s6625_s24 + $0x28] sm:$0xff]  ;;  %v64_v37 = vld [vmem:[%s6625_s24 + $0x38] sm:$0xff]  ;;  %v61_v38 = vld [vmem:[%s6625_s24 + $0x20] sm:$0xff] }
  0x27   :  { %5254 = vmatpush3.bf16.msra.mxu1 %v5253_v25  ;;  %5224 = vmatprep.subr.bf16.mxu0 %v5223_v26  ;;  %v63_v39 = vld [vmem:[%s6625_s24 + $0x30] sm:$0xff]  ;;  %v66_v40 = vld [vmem:[%s6625_s24 + $0x48] sm:$0xff]  ;;  %v68_v41 = vld [vmem:[%s6625_s24 + $0x58] sm:$0xff] }
  0x28   :  { %5256 = vmatprep.subr.bf16.mxu1 %v5255_v29  ;;  %v65_v42 = vld [vmem:[%s6625_s24 + $0x40] sm:$0xff]  ;;  %v67_v43 = vld [vmem:[%s6625_s24 + $0x50] sm:$0xff]  ;;  %v70_v44 = vld [vmem:[%s6625_s24 + $0x68] sm:$0xff] }
  0x29   :  { %v72_v45 = vld [vmem:[%s6625_s24 + $0x78] sm:$0xff]  ;;  %v69_v46 = vld [vmem:[%s6625_s24 + $0x60] sm:$0xff]  ;;  %v71_v47 = vld [vmem:[%s6625_s24 + $0x70] sm:$0xff] }
  0x2a   :  { %5226 = vmatpush3.bf16.msra.mxu0 %v5225_v32  ;;  %v4175_v48 = vld [vmem:[%s6601_s5 + $0x10] sm:$0xff]  ;;  %v4176_v49 = vld [vmem:[%s6601_s5 + $0x18] sm:$0xff]  ;;  %v366_v50 = vld [vmem:[%s6601_s5] sm:$0xff] }
  0x2b   :  { %5258 = vmatpush3.bf16.msra.mxu1 %v5257_v33  ;;  %v5263_v51 = vpack.c.bf16 %v4176_v49, %v4175_v48  ;;  %v367_v52 = vld [vmem:[%s6601_s5 + $0x8] sm:$0xff]  ;;  %v4193_v54 = vld [vmem:[%s6601_s5 + $0x20] sm:$0xff] }
  0x2c   :  { %v5259_v53 = vpack.c.bf16 %v367_v52, %v366_v50  ;;  %v4194_v55 = vld [vmem:[%s6601_s5 + $0x28] sm:$0xff]  ;;  %v343_v52 = vlaneseq }
  0x2d   :  { %202 = vmatmul.mubr.f32.vlgmr.msra.gmra.mrb[0].mxu0 %v57_v34  ;;  %5264 = vmatprep.subr.bf16.mxu1 %v5263_v51  ;;  %v5935_v56 = vpack.c.bf16 %v4194_v55, %v4193_v54  ;;  %v307_v54 = vld [vmem:[%s6598_s2] sm:$0x1] }
  0x2e   :  { %287 = vmatmul.mubr.f32.vlgmr.msra.gmra.mrb[0].mxu1 %v59_v35  ;;  %206 = vmatprep.mubr.f32.mxu0 %v62_v36 }
  0x2f   :  { %291 = vmatprep.mubr.f32.mxu1 %v64_v37  ;;  %5266 = vmatpush3.bf16.msra.mxu1 %v5263_v51 }
  0x30   :  { %5260 = vmatprep.subr.bf16.mxu0 %v5259_v53  ;;  %5284 = vmatprep.subr.bf16.mxu1 %v5935_v56 }
  0x31   :  { %207 = vmatmul.mubr.f32.gmra.mrb[2].mxu0 %v61_v38 }
  0x32   :  { %292 = vmatmul.mubr.f32.gmra.mrb[2].mxu1 %v63_v39  ;;  %211 = vmatprep.mubr.f32.mxu0 %v66_v40 }
  0x33   :  { %296 = vmatprep.mubr.f32.mxu1 %v68_v41  ;;  %5262 = vmatpush3.bf16.msra.mxu0 %v5259_v53  ;;  %v344_v53 = vshrl.u32 %v343_v52, 7 }
  0x35   :  { %212 = vmatmul.mubr.f32.gmra.mrb[4].mxu0 %v65_v42  ;;  %v5941_v55 = vsub.s32 0, %v344_v53  ;;  %v6108_v53 = vld [vmem:[%s6600_s4 + $0x10] sm:$0xff] }
  0x36   :  { %297 = vmatmul.mubr.f32.gmra.mrb[4].mxu1 %v67_v43  ;;  %216 = vmatprep.mubr.f32.mxu0 %v70_v44 }
  0x37   :  { %301 = vmatprep.mubr.f32.mxu1 %v72_v45 }
  0x39   :  { %217 = vmatmul.mubr.f32.gmra.mrb[6].mxu0 %v69_v46 }
  0x3a   :  { %302 = vmatmul.mubr.f32.gmra.mrb[6].mxu1 %v71_v47 }
 0x100   :  { %v4423_v57 = vpop.f32.mrb[0].mxu0 }
 0x101   :  { %v4467_v58 = vpop.f32.mrb[0].mxu1  ;;  %v4424_v59 = vpop.f32.mrb[1].mxu0 }
 0x102   :  { %v4425_v60 = vadd.f32 %v4424_v59, %v4423_v57  ;;  %v4468_v61 = vpop.f32.mrb[1].mxu1 }
 0x103   :  { %v4469_v62 = vadd.f32 %v4468_v61, %v4467_v58 }
 0x104   :  { %v4426_v63 = vpop.f32.mrb[2].mxu0 }
 0x105   :  { %v289_v0 = vadd.f32 %v4469_v62, %v4425_v60  ;;  %v4470_v1 = vpop.f32.mrb[2].mxu1  ;;  %v4427_v2 = vpop.f32.mrb[3].mxu0  ;;  %v4170_v60 = vld [vmem:[%s6599_s3] ss:$0 sm:$0xff] }
 0x106   :  { %v4428_v3 = vadd.f32 %v4427_v2, %v4426_v63  ;;  %v4471_v4 = vpop.f32.mrb[3].mxu1 }
 0x107   :  { %v4472_v5 = vadd.f32 %v4471_v4, %v4470_v1  ;;  %v319_v12 = vmul.f32 %v289_v0, %v289_v0  ;;  %v4207_v4 = vld [vmem:[%s6601_s5 + $0x30] sm:$0xff] }
 0x108   :  { %v4429_v6 = vpop.f32.mrb[4].mxu0 }
 0x109   :  { %v294_v7 = vadd.f32 %v4472_v5, %v4428_v3  ;;  %v4473_v8 = vpop.f32.mrb[4].mxu1  ;;  %v4430_v9 = vpop.f32.mrb[5].mxu0  ;;  %v4208_v5 = vld [vmem:[%s6601_s5 + $0x38] sm:$0xff] }
 0x10a   :  { %v4431_v10 = vadd.f32 %v4430_v9, %v4429_v6  ;;  %v4474_v11 = vpop.f32.mrb[5].mxu1 }
 0x10b   :  { %v309_v13 = vadd.f32 %v294_v7, %v289_v0  ;;  %v320_v14 = vmul.f32 %v294_v7, %v294_v7  ;;  %v4475_v15 = vadd.f32 %v4474_v11, %v4473_v8 }
 0x10c   :  { %v4432_v16 = vpop.f32.mrb[6].mxu0 }
 0x10d   :  { %v323_v17 = vadd.f32 %v320_v14, %v319_v12  ;;  %v299_v18 = vadd.f32 %v4475_v15, %v4431_v10  ;;  %v4476_v19 = vpop.f32.mrb[6].mxu1  ;;  %v4433_v20 = vpop.f32.mrb[7].mxu0  ;;  %v5295_v10 = vpack.c.bf16 %v4208_v5, %v4207_v4  ;;  %v4221_v12 = vld [vmem:[%s6601_s5 + $0x40] sm:$0xff]  ;;  %v4236_v15 = vld [vmem:[%s6601_s5 + $0x58] sm:$0xff]  ;;  %v6136_v4 = vld [vmem:[%s6600_s4 + $0x50] sm:$0xff] }
 0x10e   :  { %v4434_v21 = vadd.f32 %v4433_v20, %v4432_v16  ;;  %v4477_v22 = vpop.f32.mrb[7].mxu1  ;;  %v4263_v20 = vld [vmem:[%s6601_s5 + $0x70] sm:$0xff] }
 0x10f   :  { %v310_v23 = vadd.f32 %v309_v13, %v299_v18  ;;  %v321_v24 = vmul.f32 %v299_v18, %v299_v18  ;;  %v4478_v25 = vadd.f32 %v4477_v22, %v4476_v19  ;;  %v4222_v13 = vld [vmem:[%s6601_s5 + $0x48] sm:$0xff] }
 0x110   :  { %v5307_v14 = vpack.c.bf16 %v4222_v13, %v4221_v12  ;;  %v6159_v13 = vld [vmem:[%s6600_s4 + $0x68] sm:$0xff] }
 0x111   :  { %v324_v26 = vadd.f32 %v323_v17, %v321_v24  ;;  %v304_v27 = vadd.f32 %v4478_v25, %v4434_v21  ;;  %v4249_v17 = vld [vmem:[%s6601_s5 + $0x60] sm:$0xff]  ;;  %v4264_v21 = vld [vmem:[%s6601_s5 + $0x78] sm:$0xff]  ;;  %v4278_v24 = vld [vmem:[%s6601_s5 + $0x88] sm:$0xff] }
 0x112   :  { %v5343_v22 = vpack.c.bf16 %v4264_v21, %v4263_v20 }
 0x113   :  { %v311_v28 = vadd.f32 %v310_v23, %v304_v27  ;;  %v322_v29 = vmul.f32 %v304_v27, %v304_v27  ;;  %v4277_v23 = vld [vmem:[%s6601_s5 + $0x80] sm:$0xff] }
 0x114   :  { %v5355_v25 = vpack.c.bf16 %v4278_v24, %v4277_v23  ;;  %v6192_v24 = vld [vmem:[%s6600_s4 + $0x90] sm:$0xff] }
 0x115   :  { %v312_v30 = vrot.slane %v311_v28, 4  ;;  %v325_v31 = vadd.f32 %v324_v26, %v322_v29  ;;  %v6068_v26 = vld [vmem:[%s6600_s4 + $0x20] sm:$0xff] }
 0x117   :  { %v313_v32 = vadd.f32 %v312_v30, %v311_v28  ;;  %v326_v33 = vrot.slane %v325_v31, 4 }
 0x119   :  { %v314_v34 = vrot.slane %v313_v32, 2  ;;  %v327_v35 = vadd.f32 %v326_v33, %v325_v31 }
 0x11b   :  { %v315_v36 = vadd.f32 %v314_v34, %v313_v32  ;;  %v328_v37 = vrot.slane %v327_v35, 2 }
 0x11d   :  { %v316_v38 = vrot.slane %v315_v36, 1  ;;  %v329_v39 = vadd.f32 %v328_v37, %v327_v35 }
 0x11f   :  { %v317_v40 = vadd.f32 %v316_v38, %v315_v36  ;;  %v330_v41 = vrot.slane %v329_v39, 1 }
 0x121   :  { %v318_v42 = vmul.f32 0.03125, %v317_v40  ;;  %v331_v43 = vadd.f32 %v330_v41, %v329_v39  ;;  %v6075_v41 = vld [vmem:[%s6600_s4 + $0x28] sm:$0xff] }
 0x123   :  { %v332_v44 = vmul.f32 0.03125, %v331_v43  ;;  %v333_v45 = vmul.f32 %v318_v42, %v318_v42  ;;  %v335_v46 = vsub.f32 %v289_v0, %v318_v42  ;;  %v336_v47 = vsub.f32 %v294_v7, %v318_v42  ;;  %v6080_v43 = vld [vmem:[%s6600_s4 + $0x30] sm:$0xff] }
 0x124   :  { %v337_v48 = vsub.f32 %v299_v18, %v318_v42  ;;  %v338_v49 = vsub.f32 %v304_v27, %v318_v42  ;;  %v4250_v18 = vld [vmem:[%s6601_s5 + $0x68] sm:$0xff] }
 0x125   :  { %v334_v50 = vsub.f32 %v332_v44, %v333_v45  ;;  %v5331_v19 = vpack.c.bf16 %v4250_v18, %v4249_v17  ;;  %v6173_v17 = vld [vmem:[%s6600_s4 + $0x78] sm:$0xff] }
 0x127   :  { %v339_v51 = vadd.f32 1e-05, %v334_v50 }
 0x129   :  { %5550 = vrsqrt.f32 %v339_v51  ;;  %v6103_v51 = vld [vmem:[%s6600_s4 + $0x8] sm:$0xff] }
 0x133   :  { %v5551_v57 = vpop.eup %5550 }
 0x134   :  { %v341_v58 = vmul.f32 %v5551_v57, %v307_v54 }
 0x136   :  { %v346_v59 = vrot.slane %v341_v58, %v5941_v55  ;;  %v6117_v58 = vld [vmem:[%s6600_s4 + $0x18] sm:$0xff] }
 0x138   :  { %v348_v61 = vmul.f32 %v346_v59, %v335_v46  ;;  %v349_v62 = vmul.f32 %v346_v59, %v336_v47  ;;  %v350_v63 = vmul.f32 %v346_v59, %v337_v48  ;;  %v351_v0 = vmul.f32 %v346_v59, %v338_v49  ;;  %v6089_v46 = vld [vmem:[%s6600_s4 + $0x38] sm:$0xff]  ;;  %v6094_v48 = vld [vmem:[%s6600_s4] sm:$0xff] }
 0x13a   :  { %v5947_v1 = vadd.f32 %v4170_v60, %v348_v61  ;;  %v5949_v2 = vadd.f32 %v4170_v60, %v349_v62  ;;  %v5951_v3 = vadd.f32 %v4170_v60, %v350_v63  ;;  %v5965_v8 = vadd.f32 %v4170_v60, %v351_v0  ;;  %v6122_v60 = vld [vmem:[%s6600_s4 + $0x40] sm:$0xff]  ;;  %v6131_v63 = vld [vmem:[%s6600_s4 + $0x48] sm:$0xff] }
 0x13c   :  { %v5960_v6 = vmax.f32 %v5947_v1, 0.0  ;;  %v5963_v7 = vmax.f32 %v5949_v2, 0.0  ;;  %v5968_v9 = vmax.f32 %v5951_v3, 0.0  ;;  %v365_v11 = vmax.f32 %v5965_v8, 0.0 }
 0x13e   :  { %4747 = vmatprep.mubr.msk.f32.mxu0 %vm368_vm0, %v5960_v6  ;;  %4757 = vmatprep.mubr.msk.f32.mxu1 %vm368_vm0, %v5960_v6 }
 0x13f   :  { %4748 = vmatmul.mubr.msk.f32.vlgmr.msra.gmra.mrb[8].mxu0 %vm368_vm0, %v5963_v7  ;;  %4758 = vmatmul.mubr.msk.f32.vlgmr.msra.gmra.mrb[8].mxu1 %vm368_vm0, %v5963_v7 }
 0x140   :  { %4750 = vmatprep.mubr.msk.f32.mxu0 %vm368_vm0, %v5968_v9  ;;  %4760 = vmatprep.mubr.msk.f32.mxu1 %vm368_vm0, %v5968_v9 }
 0x141   :  { %5286 = vmatpush3.bf16.msra.mxu1 %v5935_v56  ;;  %v4235_v56 = vld [vmem:[%s6601_s5 + $0x50] sm:$0xff] }
 0x142   :  { %5296 = vmatprep.subr.bf16.mxu1 %v5295_v10  ;;  %v5319_v16 = vpack.c.bf16 %v4236_v15, %v4235_v56  ;;  %v6164_v56 = vld [vmem:[%s6600_s4 + $0x70] sm:$0xff] }
 0x143   :  { %4751 = vmatmul.mubr.msk.f32.gmra.mrb[10].mxu0 %vm368_vm0, %v365_v11  ;;  %4761 = vmatmul.mubr.msk.f32.gmra.mrb[10].mxu1 %vm368_vm0, %v365_v11 }
 0x144   :  { %4795 = vmatprep.mubr.msk.f32.mxu1 %vm368_vm0, %v5960_v6  ;;  %4771 = vmatprep.mubr.msk.f32.mxu0 %vm563_vm1, %v6068_v26 }
 0x147   :  { %4796 = vmatmul.mubr.msk.f32.vlgmr.msra.gmra.mrb[12].mxu1 %vm368_vm0, %v5963_v7 }
 0x148   :  { %4798 = vmatprep.mubr.msk.f32.mxu1 %vm368_vm0, %v5968_v9  ;;  %5298 = vmatpush3.bf16.msra.mxu1 %v5295_v10  ;;  %v6150_v10 = vld [vmem:[%s6600_s4 + $0x60] sm:$0xff] }
 0x149   :  { %5308 = vmatprep.subr.bf16.mxu1 %v5307_v14 }
 0x14b   :  { %4799 = vmatmul.mubr.msk.f32.gmra.mrb[14].mxu1 %vm368_vm0, %v365_v11 }
 0x14c   :  { %4819 = vmatprep.mubr.msk.f32.mxu1 %vm368_vm0, %v5960_v6 }
 0x14f   :  { %4820 = vmatmul.mubr.msk.f32.vlgmr.msra.gmra.mrb[16].mxu1 %vm368_vm0, %v5963_v7 }
 0x150   :  { %4822 = vmatprep.mubr.msk.f32.mxu1 %vm368_vm0, %v5968_v9  ;;  %5310 = vmatpush3.bf16.msra.mxu1 %v5307_v14 }
 0x151   :  { %5320 = vmatprep.subr.bf16.mxu1 %v5319_v16 }
 0x153   :  { %4823 = vmatmul.mubr.msk.f32.gmra.mrb[18].mxu1 %vm368_vm0, %v365_v11 }
 0x154   :  { %4843 = vmatprep.mubr.msk.f32.mxu1 %vm368_vm0, %v5960_v6 }
 0x157   :  { %4844 = vmatmul.mubr.msk.f32.vlgmr.msra.gmra.mrb[20].mxu1 %vm368_vm0, %v5963_v7 }
 0x158   :  { %4846 = vmatprep.mubr.msk.f32.mxu1 %vm368_vm0, %v5968_v9  ;;  %5322 = vmatpush3.bf16.msra.mxu1 %v5319_v16 }
 0x159   :  { %5332 = vmatprep.subr.bf16.mxu1 %v5331_v19 }
 0x15b   :  { %4847 = vmatmul.mubr.msk.f32.gmra.mrb[22].mxu1 %vm368_vm0, %v365_v11 }
 0x15c   :  { %4867 = vmatprep.mubr.msk.f32.mxu1 %vm368_vm0, %v5960_v6 }
 0x15f   :  { %4868 = vmatmul.mubr.msk.f32.vlgmr.msra.gmra.mrb[24].mxu1 %vm368_vm0, %v5963_v7 }
 0x160   :  { %4870 = vmatprep.mubr.msk.f32.mxu1 %vm368_vm0, %v5968_v9  ;;  %5334 = vmatpush3.bf16.msra.mxu1 %v5331_v19  ;;  %v6178_v19 = vld [vmem:[%s6600_s4 + $0x80] sm:$0xff] }
 0x161   :  { %5344 = vmatprep.subr.bf16.mxu1 %v5343_v22 }
 0x163   :  { %4871 = vmatmul.mubr.msk.f32.gmra.mrb[26].mxu1 %vm368_vm0, %v365_v11 }
 0x164   :  { %4891 = vmatprep.mubr.msk.f32.mxu1 %vm368_vm0, %v5960_v6 }
 0x167   :  { %4892 = vmatmul.mubr.msk.f32.vlgmr.msra.gmra.mrb[28].mxu1 %vm368_vm0, %v5963_v7 }
 0x168   :  { %4894 = vmatprep.mubr.msk.f32.mxu1 %vm368_vm0, %v5968_v9  ;;  %5346 = vmatpush3.bf16.msra.mxu1 %v5343_v22  ;;  %v6187_v22 = vld [vmem:[%s6600_s4 + $0x88] sm:$0xff] }
 0x169   :  { %5356 = vmatprep.subr.bf16.mxu1 %v5355_v25 }
 0x16b   :  { %4895 = vmatmul.mubr.msk.f32.gmra.mrb[30].mxu1 %vm368_vm0, %v365_v11 }
 0x16c   :  { %4915 = vmatprep.mubr.msk.f32.mxu1 %vm368_vm0, %v5960_v6 }
 0x16f   :  { %4916 = vmatmul.mubr.msk.f32.vlgmr.msra.gmra.mrb[32].mxu1 %vm368_vm0, %v5963_v7 }
 0x170   :  { %4918 = vmatprep.mubr.msk.f32.mxu1 %vm368_vm0, %v5968_v9  ;;  %5358 = vmatpush3.bf16.msra.mxu1 %v5355_v25 }
 0x173   :  { %4919 = vmatmul.mubr.msk.f32.gmra.mrb[34].mxu1 %vm368_vm0, %v365_v11 }
 0x174   :  { %4939 = vmatprep.mubr.msk.f32.mxu1 %vm368_vm0, %v5960_v6 }
 0x177   :  { %4940 = vmatmul.mubr.msk.f32.vlgmr.msra.gmra.mrb[36].mxu1 %vm368_vm0, %v5963_v7  ;;  %v6145_v7 = vld [vmem:[%s6600_s4 + $0x58] sm:$0xff] }
 0x178   :  { %4942 = vmatprep.mubr.msk.f32.mxu1 %vm368_vm0, %v5968_v9 }
 0x17b   :  { %4943 = vmatmul.mubr.msk.f32.gmra.mrb[38].mxu1 %vm368_vm0, %v365_v11 }
 0x212   :  { %v4749_v27 = vpop.f32.mrb[8].mxu0  ;;  %v4759_v28 = vpop.f32.mrb[8].mxu1 }
 0x213   :  { %v447_v29 = vpop.f32.mrb[9].mxu0  ;;  %v539_v30 = vpop.f32.mrb[9].mxu1 }
 0x214   :  { %v5275_v31 = vpack.c.bf16 %v4749_v27, %v447_v29  ;;  %v5267_v32 = vpack.c.bf16 %v4759_v28, %v539_v30  ;;  %v6201_v28 = vld [vmem:[%s6600_s4 + $0x98] sm:$0xff]  ;;  %v6206_v30 = vld [vmem:[%s6600_s4 + $0xa0] sm:$0xff] }
 0x216   :  { %v4752_v33 = vpop.f32.mrb[10].mxu0  ;;  %v4762_v34 = vpop.f32.mrb[10].mxu1  ;;  %5268 = vmatprep.subr.bf16.mxu0 %v5267_v32 }
 0x217   :  { %v457_v35 = vpop.f32.mrb[11].mxu0  ;;  %v549_v36 = vpop.f32.mrb[11].mxu1  ;;  %5270 = vmatpush3.bf16.msra.mxu0 %v5267_v32 }
 0x218   :  { %v5279_v37 = vpack.c.bf16 %v4752_v33, %v457_v35  ;;  %v5271_v38 = vpack.c.bf16 %v4762_v34, %v549_v36  ;;  %v6215_v33 = vld [vmem:[%s6600_s4 + $0xa8] sm:$0xff]  ;;  %v6220_v35 = vld [vmem:[%s6600_s4 + $0xb0] sm:$0xff] }
 0x21a   :  { %5272 = vmatprep.subr.bf16.mxu0 %v5271_v38  ;;  %v4797_v39 = vpop.f32.mrb[12].mxu1 }
 0x21b   :  { %5274 = vmatpush3.bf16.msra.mxu0 %v5271_v38  ;;  %v827_v40 = vpop.f32.mrb[13].mxu1  ;;  %v6229_v38 = vld [vmem:[%s6600_s4 + $0xb8] sm:$0xff] }
 0x21c   :  { %v5287_v42 = vpack.c.bf16 %v4797_v39, %v827_v40  ;;  %5276 = vmatprep.subr.bf16.mxu0 %v5275_v31  ;;  %v6234_v40 = vld [vmem:[%s6600_s4 + $0xc0] sm:$0xff] }
 0x21e   :  { %4772 = vmatmul.mubr.msk.f32.vlgmr.msra.gmra.mrb[12].mxu0 %vm563_vm1, %v6075_v41  ;;  %v4800_v44 = vpop.f32.mrb[14].mxu1 }
 0x21f   :  { %5278 = vmatpush3.bf16.msra.mxu0 %v5275_v31  ;;  %v837_v45 = vpop.f32.mrb[15].mxu1  ;;  %4774 = vmatprep.mubr.msk.f32.mxu0 %vm563_vm1, %v6080_v43 }
 0x220   :  { %v5291_v47 = vpack.c.bf16 %v4800_v44, %v837_v45  ;;  %5280 = vmatprep.subr.bf16.mxu0 %v5279_v37  ;;  %v6243_v45 = vld [vmem:[%s6600_s4 + $0xc8] sm:$0xff] }
 0x222   :  { %4775 = vmatmul.mubr.msk.f32.gmra.mrb[14].mxu0 %vm563_vm1, %v6089_v46  ;;  %v4821_v49 = vpop.f32.mrb[16].mxu1 }
 0x223   :  { %5282 = vmatpush3.bf16.msra.mxu0 %v5279_v37  ;;  %v1021_v50 = vpop.f32.mrb[17].mxu1  ;;  %4785 = vmatprep.mubr.msk.f32.mxu0 %vm563_vm1, %v6094_v48 }
 0x224   :  { %v5299_v52 = vpack.c.bf16 %v4821_v49, %v1021_v50  ;;  %5288 = vmatprep.subr.bf16.mxu0 %v5287_v42  ;;  %v6248_v49 = vld [vmem:[%s6600_s4 + $0xd0] sm:$0xff] }
 0x226   :  { %4786 = vmatmul.mubr.msk.f32.vlgmr.msra.gmra.mrb[12].mxu0 %vm563_vm1, %v6103_v51  ;;  %v4824_v54 = vpop.f32.mrb[18].mxu1 }
 0x227   :  { %5290 = vmatpush3.bf16.msra.mxu0 %v5287_v42  ;;  %v1031_v57 = vpop.f32.mrb[19].mxu1  ;;  %4788 = vmatprep.mubr.msk.f32.mxu0 %vm563_vm1, %v6108_v53 }
 0x228   :  { %v5303_v59 = vpack.c.bf16 %v4824_v54, %v1031_v57  ;;  %5292 = vmatprep.subr.bf16.mxu0 %v5291_v47  ;;  %v6257_v54 = vld [vmem:[%s6600_s4 + $0xd8] sm:$0xff] }
 0x22a   :  { %4789 = vmatmul.mubr.msk.f32.gmra.mrb[14].mxu0 %vm563_vm1, %v6117_v58  ;;  %v4845_v61 = vpop.f32.mrb[20].mxu1 }
 0x22b   :  { %5294 = vmatpush3.bf16.msra.mxu0 %v5291_v47  ;;  %v1215_v62 = vpop.f32.mrb[21].mxu1  ;;  %4809 = vmatprep.mubr.msk.f32.mxu0 %vm563_vm1, %v6122_v60 }
 0x22c   :  { %v5311_v0 = vpack.c.bf16 %v4845_v61, %v1215_v62  ;;  %5300 = vmatprep.subr.bf16.mxu0 %v5299_v52  ;;  %v6271_v61 = vld [vmem:[%s6600_s4 + $0xe8] sm:$0xff]  ;;  %v6276_v62 = vld [vmem:[%s6600_s4 + $0xf0] sm:$0xff] }
 0x22d   :  { %6626 = vst [vmem:[#allocation5_spill] sm:$0xff] %v6276_v62 }
 0x22e   :  { %4810 = vmatmul.mubr.msk.f32.vlgmr.msra.gmra.mrb[12].mxu0 %vm563_vm1, %v6131_v63  ;;  %v4848_v5 = vpop.f32.mrb[22].mxu1 }
 0x22f   :  { %5302 = vmatpush3.bf16.msra.mxu0 %v5299_v52  ;;  %v1225_v6 = vpop.f32.mrb[23].mxu1  ;;  %4812 = vmatprep.mubr.msk.f32.mxu0 %vm563_vm1, %v6136_v4 }
 0x230   :  { %v5315_v9 = vpack.c.bf16 %v4848_v5, %v1225_v6  ;;  %5304 = vmatprep.subr.bf16.mxu0 %v5303_v59  ;;  %v6290_v5 = vld [vmem:[%s6600_s4 + $0x100] sm:$0xff]  ;;  %v6299_v6 = vld [vmem:[%s6600_s4 + $0x108] sm:$0xff] }
 0x231   :  { %6628 = vst [vmem:[#allocation7_spill] sm:$0xff] %v6290_v5  ;;  %6629 = vst [vmem:[#allocation8_spill] sm:$0xff] %v6299_v6 }
 0x232   :  { %4813 = vmatmul.mubr.msk.f32.gmra.mrb[14].mxu0 %vm563_vm1, %v6145_v7  ;;  %v4869_v11 = vpop.f32.mrb[24].mxu1 }
 0x233   :  { %5306 = vmatpush3.bf16.msra.mxu0 %v5303_v59  ;;  %v1409_v12 = vpop.f32.mrb[25].mxu1  ;;  %4833 = vmatprep.mubr.msk.f32.mxu0 %vm563_vm1, %v6150_v10  ;;  %v6262_v59 = vld [vmem:[%s6600_s4 + $0xe0] sm:$0xff] }
 0x234   :  { %v5323_v14 = vpack.c.bf16 %v4869_v11, %v1409_v12  ;;  %5312 = vmatprep.subr.bf16.mxu0 %v5311_v0  ;;  %v6313_v11 = vld [vmem:[%s6600_s4 + $0x118] sm:$0xff]  ;;  %v2175_v12 = vld [vmem:[%s6604_s8] sm:$0xff] }
 0x235   :  { %6631 = vst [vmem:[#allocation10_spill] sm:$0xff] %v6313_v11 }
 0x236   :  { %4834 = vmatmul.mubr.msk.f32.vlgmr.msra.gmra.mrb[12].mxu0 %vm563_vm1, %v6159_v13  ;;  %v4872_v15 = vpop.f32.mrb[26].mxu1 }
 0x237   :  { %5314 = vmatpush3.bf16.msra.mxu0 %v5311_v0  ;;  %v1419_v16 = vpop.f32.mrb[27].mxu1  ;;  %4836 = vmatprep.mubr.msk.f32.mxu0 %vm563_vm1, %v6164_v56  ;;  %v6285_v0 = vld [vmem:[%s6600_s4 + $0xf8] sm:$0xff] }
 0x238   :  { %v5327_v18 = vpack.c.bf16 %v4872_v15, %v1419_v16  ;;  %5316 = vmatprep.subr.bf16.mxu0 %v5315_v9  ;;  %6627 = vst [vmem:[#allocation6_spill] sm:$0xff] %v6285_v0 }
 0x23a   :  { %4837 = vmatmul.mubr.msk.f32.gmra.mrb[14].mxu0 %vm563_vm1, %v6173_v17  ;;  %v4893_v20 = vpop.f32.mrb[28].mxu1 }
 0x23b   :  { %5318 = vmatpush3.bf16.msra.mxu0 %v5315_v9  ;;  %v1603_v21 = vpop.f32.mrb[29].mxu1  ;;  %4857 = vmatprep.mubr.msk.f32.mxu0 %vm563_vm1, %v6178_v19  ;;  %v6304_v9 = vld [vmem:[%s6600_s4 + $0x110] sm:$0xff] }
 0x23c   :  { %v5335_v23 = vpack.c.bf16 %v4893_v20, %v1603_v21  ;;  %5324 = vmatprep.subr.bf16.mxu0 %v5323_v14  ;;  %6630 = vst [vmem:[#allocation9_spill] sm:$0xff] %v6304_v9 }
 0x23e   :  { %4858 = vmatmul.mubr.msk.f32.vlgmr.msra.gmra.mrb[12].mxu0 %vm563_vm1, %v6187_v22  ;;  %v4896_v25 = vpop.f32.mrb[30].mxu1 }
 0x23f   :  { %5326 = vmatpush3.bf16.msra.mxu0 %v5323_v14  ;;  %v1613_v27 = vpop.f32.mrb[31].mxu1  ;;  %4860 = vmatprep.mubr.msk.f32.mxu0 %vm563_vm1, %v6192_v24  ;;  %v2176_v14 = vld [vmem:[%s6604_s8 + $0x8] sm:$0xff] }
 0x240   :  { %v5339_v29 = vpack.c.bf16 %v4896_v25, %v1613_v27  ;;  %5328 = vmatprep.subr.bf16.mxu0 %v5327_v18  ;;  %v5367_v15 = vpack.c.bf16 %v2176_v14, %v2175_v12 }
 0x242   :  { %4861 = vmatmul.mubr.msk.f32.gmra.mrb[14].mxu0 %vm563_vm1, %v6201_v28  ;;  %v4917_v31 = vpop.f32.mrb[32].mxu1  ;;  %5368 = vmatprep.subr.bf16.mxu1 %v5367_v15 }
 0x243   :  { %5330 = vmatpush3.bf16.msra.mxu0 %v5327_v18  ;;  %v1797_v32 = vpop.f32.mrb[33].mxu1  ;;  %4881 = vmatprep.mubr.msk.f32.mxu0 %vm563_vm1, %v6206_v30 }
 0x244   :  { %v5347_v34 = vpack.c.bf16 %v4917_v31, %v1797_v32  ;;  %5336 = vmatprep.subr.bf16.mxu0 %v5335_v23  ;;  %5370 = vmatpush3.bf16.msra.mxu1 %v5367_v15 }
 0x246   :  { %4882 = vmatmul.mubr.msk.f32.vlgmr.msra.gmra.mrb[12].mxu0 %vm563_vm1, %v6215_v33  ;;  %v4920_v36 = vpop.f32.mrb[34].mxu1 }
 0x247   :  { %5338 = vmatpush3.bf16.msra.mxu0 %v5335_v23  ;;  %v1807_v37 = vpop.f32.mrb[35].mxu1  ;;  %4884 = vmatprep.mubr.msk.f32.mxu0 %vm563_vm1, %v6220_v35 }
 0x248   :  { %v5351_v39 = vpack.c.bf16 %v4920_v36, %v1807_v37  ;;  %5340 = vmatprep.subr.bf16.mxu0 %v5339_v29 }
 0x24a   :  { %4885 = vmatmul.mubr.msk.f32.gmra.mrb[14].mxu0 %vm563_vm1, %v6229_v38  ;;  %v4941_v42 = vpop.f32.mrb[36].mxu1 }
 0x24b   :  { %5342 = vmatpush3.bf16.msra.mxu0 %v5339_v29  ;;  %v1991_v44 = vpop.f32.mrb[37].mxu1  ;;  %4905 = vmatprep.mubr.msk.f32.mxu0 %vm563_vm1, %v6234_v40 }
 0x24c   :  { %v5359_v47 = vpack.c.bf16 %v4941_v42, %v1991_v44  ;;  %5348 = vmatprep.subr.bf16.mxu0 %v5347_v34 }
 0x24e   :  { %4906 = vmatmul.mubr.msk.f32.vlgmr.msra.gmra.mrb[12].mxu0 %vm563_vm1, %v6243_v45  ;;  %v4944_v50 = vpop.f32.mrb[38].mxu1 }
 0x24f   :  { %5350 = vmatpush3.bf16.msra.mxu0 %v5347_v34  ;;  %v2001_v52 = vpop.f32.mrb[39].mxu1  ;;  %4908 = vmatprep.mubr.msk.f32.mxu0 %vm563_vm1, %v6248_v49 }
 0x250   :  { %v5363_v57 = vpack.c.bf16 %v4944_v50, %v2001_v52  ;;  %5352 = vmatprep.subr.bf16.mxu0 %v5351_v39 }
 0x252   :  { %4909 = vmatmul.mubr.msk.f32.gmra.mrb[14].mxu0 %vm563_vm1, %v6257_v54 }
 0x253   :  { %5354 = vmatpush3.bf16.msra.mxu0 %v5351_v39  ;;  %4929 = vmatprep.mubr.msk.f32.mxu0 %vm563_vm1, %v6262_v59 }
 0x254   :  { %5360 = vmatprep.subr.bf16.mxu0 %v5359_v47 }
 0x256   :  { %4930 = vmatmul.mubr.msk.f32.vlgmr.msra.gmra.mrb[12].mxu0 %vm563_vm1, %v6271_v61 }
 0x257   :  { %5362 = vmatpush3.bf16.msra.mxu0 %v5359_v47  ;;  %4932 = vmatprep.mubr.msk.f32.mxu0 %vm563_vm1, %v6276_v62 }
 0x258   :  { %5364 = vmatprep.subr.bf16.mxu0 %v5363_v57 }
 0x25a   :  { %4933 = vmatmul.mubr.msk.f32.gmra.mrb[14].mxu0 %vm563_vm1, %v6285_v0 }
 0x25b   :  { %5366 = vmatpush3.bf16.msra.mxu0 %v5363_v57  ;;  %4953 = vmatprep.mubr.msk.f32.mxu0 %vm563_vm1, %v6290_v5 }
 0x25e   :  { %4954 = vmatmul.mubr.msk.f32.vlgmr.msra.gmra.mrb[12].mxu0 %vm563_vm1, %v6299_v6 }
 0x25f   :  { %4956 = vmatprep.mubr.msk.f32.mxu0 %vm563_vm1, %v6304_v9 }
 0x262   :  { %4957 = vmatmul.mubr.msk.f32.gmra.mrb[14].mxu0 %vm563_vm1, %v6313_v11 }
 0x331   :  { %v4955_v16 = vpop.f32.mrb[12].mxu0 }
 0x332   :  { %v2129_v18 = vmul.f32 %v4955_v16, %v4955_v16  ;;  %v2093_v20 = vpop.f32.mrb[13].mxu0 }
 0x333   :  { %v2118_v21 = vadd.f32 %v4955_v16, %v2093_v20  ;;  %v2128_v23 = vmul.f32 %v2093_v20, %v2093_v20 }
 0x335   :  { %v2132_v25 = vadd.f32 %v2129_v18, %v2128_v23  ;;  %v4958_v27 = vpop.f32.mrb[14].mxu0 }
 0x336   :  { %v2103_v29 = vpop.f32.mrb[15].mxu0  ;;  %v2131_v34 = vmul.f32 %v4958_v27, %v4958_v27 }
 0x337   :  { %v2119_v31 = vadd.f32 %v2118_v21, %v2103_v29  ;;  %v2130_v32 = vmul.f32 %v2103_v29, %v2103_v29 }
 0x339   :  { %v2120_v36 = vadd.f32 %v4958_v27, %v2119_v31  ;;  %v2133_v37 = vadd.f32 %v2132_v25, %v2130_v32 }
 0x33b   :  { %v2121_v39 = vrot.slane %v2120_v36, 4  ;;  %v2134_v42 = vadd.f32 %v2133_v37, %v2131_v34 }
 0x33d   :  { %v2122_v44 = vadd.f32 %v2121_v39, %v2120_v36  ;;  %v2135_v47 = vrot.slane %v2134_v42, 4  ;;  %v2116_v36 = vld [vmem:[%s6602_s6] sm:$0x1]  ;;  %s5584_s6 = smov [#allocation2]  }
 0x33f   :  { %v2123_v50 = vrot.slane %v2122_v44, 2  ;;  %v2136_v52 = vadd.f32 %v2135_v47, %v2134_v42 }
 0x341   :  { %v2124_v57 = vadd.f32 %v2123_v50, %v2122_v44  ;;  %v2137_v12 = vrot.slane %v2136_v52, 2 }
 0x343   :  { %v2125_v14 = vrot.slane %v2124_v57, 1  ;;  %v2138_v15 = vadd.f32 %v2137_v12, %v2136_v52 }
 0x345   :  { %v2126_v11 = vadd.f32 %v2125_v14, %v2124_v57  ;;  %v2139_v9 = vrot.slane %v2138_v15, 1  ;;  %v2337_v14 = vld [vmem:[%s6607_s11] sm:$0xff] }
 0x347   :  { %v2127_v18 = vmul.f32 0.03125, %v2126_v11  ;;  %v2140_v23 = vadd.f32 %v2139_v9, %v2138_v15  ;;  %v4291_v9 = vld [vmem:[%s6603_s7] ss:$0 sm:$0xff]  ;;  %s4159_s7 = sshll.u32 %s5584_s6, 4  ;;  %s4160_s7 = int_to_ptr.vmem [resolvable:$true] %s4159_s7 }
 0x348   :  { %p5565_p1 = scmp.lt.s32.totalorder %s4160_s7, %s4160_s7 }
 0x349   :  { %v2141_v6 = vmul.f32 0.03125, %v2140_v23  ;;  %v2142_v21 = vmul.f32 %v2127_v18, %v2127_v18  ;;  %v2145_v5 = vsub.f32 %v4955_v16, %v2127_v18  ;;  %v2146_v0 = vsub.f32 %v2103_v29, %v2127_v18 }
 0x34a   :  { %v2144_v31 = vsub.f32 %v2093_v20, %v2127_v18  ;;  %v2147_v25 = vsub.f32 %v4958_v27, %v2127_v18  ;;  %v2338_v18 = vld [vmem:[%s6607_s11 + $0x8] sm:$0xff] }
 0x34b   :  { %v2143_v32 = vsub.f32 %v2141_v6, %v2142_v21  ;;  %v5371_v23 = vpack.c.bf16 %v2338_v18, %v2337_v14  ;;  %v4315_v21 = vld [vmem:[%s6607_s11 + $0x20] sm:$0xff] }
 0x34d   :  { %v2148_v34 = vadd.f32 1e-05, %v2143_v32  ;;  %5372 = vmatprep.subr.bf16.mxu1 %v5371_v23 }
 0x34f   :  { %5552 = vrsqrt.f32 %v2148_v34 }
 0x359   :  { %v5553_v37 = vpop.eup %5552 }
 0x35a   :  { %v2150_v39 = vmul.f32 %v5553_v37, %v2116_v36 }
 0x35c   :  { %v2155_v42 = vrot.slane %v2150_v39, %v5941_v55 }
 0x35e   :  { %v2158_v11 = vmul.f32 %v2155_v42, %v2145_v5  ;;  %v2159_v16 = vmul.f32 %v2155_v42, %v2146_v0  ;;  %v2157_v29 = vmul.f32 %v2155_v42, %v2144_v31  ;;  %v2160_v20 = vmul.f32 %v2155_v42, %v2147_v25  ;;  %v4301_v0 = vld [vmem:[%s6607_s11 + $0x10] sm:$0xff]  ;;  %v4302_v5 = vld [vmem:[%s6607_s11 + $0x18] sm:$0xff]  ;;  %v4316_v31 = vld [vmem:[%s6607_s11 + $0x28] sm:$0xff] }
 0x35f   :  { %v5375_v15 = vpack.c.bf16 %v4302_v5, %v4301_v0  ;;  %v6352_v25 = vpack.c.bf16 %v4316_v31, %v4315_v21 }
 0x360   :  { %v2168_v27 = vadd.f32 %v4291_v9, %v2158_v11  ;;  %v2169_v6 = vadd.f32 %v4291_v9, %v2159_v16  ;;  %v2167_v44 = vadd.f32 %v4291_v9, %v2157_v29  ;;  %v2170_v52 = vadd.f32 %v4291_v9, %v2160_v20 }
 0x361   :  { %5376 = vmatprep.subr.bf16.mxu0 %v5375_v15 }
 0x362   :  { %v2172_v47 = vmax.f32 %v2168_v27, 0.0  ;;  %v2171_v50 = vmax.f32 %v2167_v44, 0.0  ;;  %v2173_v57 = vmax.f32 %v2169_v6, 0.0  ;;  %v2174_v12 = vmax.f32 %v2170_v52, 0.0  ;;  %5378 = vmatpush3.bf16.msra.mxu0 %v5375_v15 }
 0x363   :  { %5396 = vmatprep.subr.bf16.mxu0 %v6352_v25 }
 0x364   :  { %4963 = vmatprep.mubr.msk.f32.mxu1 %vm368_vm0, %v2171_v50 }
 0x365   :  { %4964 = vmatmul.mubr.msk.f32.vlgmr.msra.gmra.mrb[40].mxu1 %vm368_vm0, %v2172_v47 }
 0x366   :  { %4966 = vmatprep.mubr.msk.f32.mxu1 %vm368_vm0, %v2173_v57  ;;  %5374 = vmatpush3.bf16.msra.mxu1 %v5371_v23 }
 0x369   :  { %4967 = vmatmul.mubr.msk.f32.gmra.mrb[42].mxu1 %vm368_vm0, %v2174_v12 }
 0x438   :  { %v4965_v32 = vpop.f32.mrb[40].mxu1 }
 0x439   :  { %v2287_v34 = vmul.f32 %v4965_v32, %v4965_v32  ;;  %v2255_v36 = vpop.f32.mrb[41].mxu1 }
 0x43a   :  { %v2276_v37 = vadd.f32 %v4965_v32, %v2255_v36  ;;  %v2286_v39 = vmul.f32 %v2255_v36, %v2255_v36 }
 0x43c   :  { %v2290_v42 = vadd.f32 %v2287_v34, %v2286_v39  ;;  %v4968_v9 = vpop.f32.mrb[42].mxu1 }
 0x43d   :  { %v2265_v11 = vpop.f32.mrb[43].mxu1  ;;  %v2289_v20 = vmul.f32 %v4968_v9, %v4968_v9 }
 0x43e   :  { %v2277_v16 = vadd.f32 %v2276_v37, %v2265_v11  ;;  %v2288_v29 = vmul.f32 %v2265_v11, %v2265_v11 }
 0x440   :  { %v2278_v27 = vadd.f32 %v4968_v9, %v2277_v16  ;;  %v2291_v6 = vadd.f32 %v2290_v42, %v2288_v29 }
 0x442   :  { %v2279_v44 = vrot.slane %v2278_v27, 4  ;;  %v2292_v47 = vadd.f32 %v2291_v6, %v2289_v20 }
 0x444   :  { %v2280_v50 = vadd.f32 %v2279_v44, %v2278_v27  ;;  %v2293_v52 = vrot.slane %v2292_v47, 4  ;;  %v2274_v27 = vld [vmem:[%s6605_s9] sm:$0x1] }
 0x446   :  { %v2281_v57 = vrot.slane %v2280_v50, 2  ;;  %v2294_v12 = vadd.f32 %v2293_v52, %v2292_v47 }
 0x448   :  { %v2282_v0 = vadd.f32 %v2281_v57, %v2280_v50  ;;  %v2295_v5 = vrot.slane %v2294_v12, 2  ;;  %v4296_v50 = vld [vmem:[%s6606_s10] ss:$0 sm:$0xff] }
 0x44a   :  { %v2283_v14 = vrot.slane %v2282_v0, 1  ;;  %v2296_v15 = vadd.f32 %v2295_v5, %v2294_v12 }
 0x44c   :  { %v2284_v18 = vadd.f32 %v2283_v14, %v2282_v0  ;;  %v2297_v23 = vrot.slane %v2296_v15, 1 }
 0x44e   :  { %v2285_v21 = vmul.f32 0.03125, %v2284_v18  ;;  %v2298_v31 = vadd.f32 %v2297_v23, %v2296_v15  ;;  %v4325_v18 = vld [vmem:[%s6607_s11 + $0x30] sm:$0xff] }
 0x450   :  { %v2299_v34 = vmul.f32 0.03125, %v2298_v31  ;;  %v2300_v37 = vmul.f32 %v2285_v21, %v2285_v21  ;;  %v2302_v39 = vsub.f32 %v2255_v36, %v2285_v21  ;;  %v2303_v62 = vsub.f32 %v4965_v32, %v2285_v21  ;;  %v4335_v31 = vld [vmem:[%s6607_s11 + $0x40] sm:$0xff] }
 0x451   :  { %v2304_v16 = vsub.f32 %v2265_v11, %v2285_v21  ;;  %v2305_v42 = vsub.f32 %v4968_v9, %v2285_v21 }
 0x452   :  { %v2301_v29 = vsub.f32 %v2299_v34, %v2300_v37  ;;  %v4336_v34 = vld [vmem:[%s6607_s11 + $0x48] sm:$0xff]  ;;  %v4345_v37 = vld [vmem:[%s6607_s11 + $0x50] sm:$0xff] }
 0x454   :  { %v2306_v20 = vadd.f32 1e-05, %v2301_v29 }
 0x456   :  { %5554 = vrsqrt.f32 %v2306_v20  ;;  %v4365_v20 = vld [vmem:[%s6607_s11 + $0x70] sm:$0xff] }
 0x460   :  { %v5555_v6 = vpop.eup %5554 }
 0x461   :  { %v2308_v44 = vmul.f32 %v5555_v6, %v2274_v27  ;;  %v4366_v27 = vld [vmem:[%s6607_s11 + $0x78] sm:$0xff] }
 0x462   :  { %v5455_v6 = vpack.c.bf16 %v4366_v27, %v4365_v20 }
 0x463   :  { %v2313_v47 = vrot.slane %v2308_v44, %v5941_v55  ;;  %v4375_v44 = vld [vmem:[%s6607_s11 + $0x80] sm:$0xff] }
 0x465   :  { %v2315_v52 = vmul.f32 %v2313_v47, %v2302_v39  ;;  %v2316_v36 = vmul.f32 %v2313_v47, %v2303_v62  ;;  %v2317_v32 = vmul.f32 %v2313_v47, %v2304_v16  ;;  %v2318_v11 = vmul.f32 %v2313_v47, %v2305_v42  ;;  %v4326_v62 = vld [vmem:[%s6607_s11 + $0x38] sm:$0xff]  ;;  %v4355_v16 = vld [vmem:[%s6607_s11 + $0x60] sm:$0xff]  ;;  %v4356_v42 = vld [vmem:[%s6607_s11 + $0x68] sm:$0xff] }
 0x466   :  { %v5407_v21 = vpack.c.bf16 %v4326_v62, %v4325_v18  ;;  %v4346_v39 = vld [vmem:[%s6607_s11 + $0x58] sm:$0xff]  ;;  %v5443_v29 = vpack.c.bf16 %v4356_v42, %v4355_v16  ;;  %v4376_v47 = vld [vmem:[%s6607_s11 + $0x88] sm:$0xff] }
 0x467   :  { %v2325_v9 = vadd.f32 %v4296_v50, %v2315_v52  ;;  %v2326_v57 = vadd.f32 %v4296_v50, %v2316_v36  ;;  %v2327_v12 = vadd.f32 %v4296_v50, %v2317_v32  ;;  %v2328_v0 = vadd.f32 %v4296_v50, %v2318_v11 }
 0x468   :  { %v5467_v50 = vpack.c.bf16 %v4376_v47, %v4375_v44 }
 0x469   :  { %v6363_v5 = vadd.f32 %v2325_v9, %v5947_v1  ;;  %v6366_v14 = vadd.f32 %v2326_v57, %v5949_v2  ;;  %v6369_v15 = vadd.f32 %v2327_v12, %v5951_v3  ;;  %v6384_v2 = vadd.f32 %v2328_v0, %v5965_v8 }
 0x46b   :  { %v6378_v23 = vmax.f32 %v6363_v5, 0.0  ;;  %v6381_v1 = vmax.f32 %v6366_v14, 0.0  ;;  %v6387_v3 = vmax.f32 %v6369_v15, 0.0  ;;  %v2336_v8 = vmax.f32 %v6384_v2, 0.0 }
 0x46d   :  { %4973 = vmatprep.mubr.msk.f32.mxu1 %vm368_vm0, %v6378_v23  ;;  %4983 = vmatprep.mubr.msk.f32.mxu0 %vm368_vm0, %v6378_v23 }
 0x46e   :  { %4974 = vmatmul.mubr.msk.f32.vlgmr.msra.gmra.mrb[44].mxu1 %vm368_vm0, %v6381_v1  ;;  %4984 = vmatmul.mubr.msk.f32.vlgmr.msra.gmra.mrb[16].mxu0 %vm368_vm0, %v6381_v1 }
 0x46f   :  { %4976 = vmatprep.mubr.msk.f32.mxu1 %vm368_vm0, %v6387_v3  ;;  %4986 = vmatprep.mubr.msk.f32.mxu0 %vm368_vm0, %v6387_v3 }
 0x470   :  { %5398 = vmatpush3.bf16.msra.mxu0 %v6352_v25  ;;  %v5419_v25 = vpack.c.bf16 %v4336_v34, %v4335_v31 }
 0x471   :  { %5408 = vmatprep.subr.bf16.mxu0 %v5407_v21 }
 0x472   :  { %4977 = vmatmul.mubr.msk.f32.gmra.mrb[46].mxu1 %vm368_vm0, %v2336_v8  ;;  %4987 = vmatmul.mubr.msk.f32.gmra.mrb[18].mxu0 %vm368_vm0, %v2336_v8 }
 0x473   :  { %5021 = vmatprep.mubr.msk.f32.mxu0 %vm368_vm0, %v6378_v23  ;;  %4997 = vmatprep.mubr.msk.f32.mxu1 %vm563_vm1, %v6068_v26  ;;  %v5431_v26 = vpack.c.bf16 %v4346_v39, %v4345_v37 }
 0x476   :  { %5022 = vmatmul.mubr.msk.f32.vlgmr.msra.gmra.mrb[20].mxu0 %vm368_vm0, %v6381_v1 }
 0x477   :  { %5024 = vmatprep.mubr.msk.f32.mxu0 %vm368_vm0, %v6387_v3  ;;  %5410 = vmatpush3.bf16.msra.mxu0 %v5407_v21 }
 0x478   :  { %5420 = vmatprep.subr.bf16.mxu0 %v5419_v25 }
 0x47a   :  { %5025 = vmatmul.mubr.msk.f32.gmra.mrb[22].mxu0 %vm368_vm0, %v2336_v8 }
 0x47b   :  { %5045 = vmatprep.mubr.msk.f32.mxu0 %vm368_vm0, %v6378_v23 }
 0x47e   :  { %5046 = vmatmul.mubr.msk.f32.vlgmr.msra.gmra.mrb[24].mxu0 %vm368_vm0, %v6381_v1 }
 0x47f   :  { %5048 = vmatprep.mubr.msk.f32.mxu0 %vm368_vm0, %v6387_v3  ;;  %5422 = vmatpush3.bf16.msra.mxu0 %v5419_v25 }
 0x480   :  { %5432 = vmatprep.subr.bf16.mxu0 %v5431_v26 }
 0x482   :  { %5049 = vmatmul.mubr.msk.f32.gmra.mrb[26].mxu0 %vm368_vm0, %v2336_v8 }
 0x483   :  { %5069 = vmatprep.mubr.msk.f32.mxu0 %vm368_vm0, %v6378_v23 }
 0x486   :  { %5070 = vmatmul.mubr.msk.f32.vlgmr.msra.gmra.mrb[28].mxu0 %vm368_vm0, %v6381_v1 }
 0x487   :  { %5072 = vmatprep.mubr.msk.f32.mxu0 %vm368_vm0, %v6387_v3  ;;  %5434 = vmatpush3.bf16.msra.mxu0 %v5431_v26 }
 0x488   :  { %5444 = vmatprep.subr.bf16.mxu0 %v5443_v29 }
 0x48a   :  { %5073 = vmatmul.mubr.msk.f32.gmra.mrb[30].mxu0 %vm368_vm0, %v2336_v8 }
 0x48b   :  { %5093 = vmatprep.mubr.msk.f32.mxu0 %vm368_vm0, %v6378_v23 }
 0x48e   :  { %5094 = vmatmul.mubr.msk.f32.vlgmr.msra.gmra.mrb[32].mxu0 %vm368_vm0, %v6381_v1 }
 0x48f   :  { %5096 = vmatprep.mubr.msk.f32.mxu0 %vm368_vm0, %v6387_v3  ;;  %5446 = vmatpush3.bf16.msra.mxu0 %v5443_v29 }
 0x490   :  { %5456 = vmatprep.subr.bf16.mxu0 %v5455_v6 }
 0x492   :  { %5097 = vmatmul.mubr.msk.f32.gmra.mrb[34].mxu0 %vm368_vm0, %v2336_v8 }
 0x493   :  { %5117 = vmatprep.mubr.msk.f32.mxu0 %vm368_vm0, %v6378_v23 }
 0x496   :  { %5118 = vmatmul.mubr.msk.f32.vlgmr.msra.gmra.mrb[36].mxu0 %vm368_vm0, %v6381_v1 }
 0x497   :  { %5120 = vmatprep.mubr.msk.f32.mxu0 %vm368_vm0, %v6387_v3  ;;  %5458 = vmatpush3.bf16.msra.mxu0 %v5455_v6 }
 0x498   :  { %5468 = vmatprep.subr.bf16.mxu0 %v5467_v50 }
 0x49a   :  { %5121 = vmatmul.mubr.msk.f32.gmra.mrb[38].mxu0 %vm368_vm0, %v2336_v8 }
 0x49b   :  { %5141 = vmatprep.mubr.msk.f32.mxu0 %vm368_vm0, %v6378_v23 }
 0x49e   :  { %5142 = vmatmul.mubr.msk.f32.vlgmr.msra.gmra.mrb[40].mxu0 %vm368_vm0, %v6381_v1 }
 0x49f   :  { %5144 = vmatprep.mubr.msk.f32.mxu0 %vm368_vm0, %v6387_v3  ;;  %5470 = vmatpush3.bf16.msra.mxu0 %v5467_v50 }
 0x4a2   :  { %5145 = vmatmul.mubr.msk.f32.gmra.mrb[42].mxu0 %vm368_vm0, %v2336_v8 }
 0x4a3   :  { %5165 = vmatprep.mubr.msk.f32.mxu0 %vm368_vm0, %v6378_v23 }
 0x4a6   :  { %5166 = vmatmul.mubr.msk.f32.vlgmr.msra.gmra.mrb[44].mxu0 %vm368_vm0, %v6381_v1 }
 0x4a7   :  { %5168 = vmatprep.mubr.msk.f32.mxu0 %vm368_vm0, %v6387_v3 }
 0x4aa   :  { %5169 = vmatmul.mubr.msk.f32.gmra.mrb[46].mxu0 %vm368_vm0, %v2336_v8 }
 0x541   :  { %v4975_v52 = vpop.f32.mrb[44].mxu1  ;;  %v4985_v36 = vpop.f32.mrb[16].mxu0 }
 0x542   :  { %v2417_v32 = vpop.f32.mrb[45].mxu1  ;;  %v2505_v11 = vpop.f32.mrb[17].mxu0 }
 0x543   :  { %v5387_v9 = vpack.c.bf16 %v4975_v52, %v2417_v32  ;;  %v5379_v57 = vpack.c.bf16 %v4985_v36, %v2505_v11  ;;  %v3993_v32 = vld [vmem:[%s6610_s14 + $0x8] sm:$0xff] }
 0x545   :  { %v4978_v12 = vpop.f32.mrb[46].mxu1  ;;  %v4988_v0 = vpop.f32.mrb[18].mxu0  ;;  %5380 = vmatprep.subr.bf16.mxu1 %v5379_v57 }
 0x546   :  { %v2427_v18 = vpop.f32.mrb[47].mxu1  ;;  %v2515_v62 = vpop.f32.mrb[19].mxu0  ;;  %5382 = vmatpush3.bf16.msra.mxu1 %v5379_v57 }
 0x547   :  { %v5391_v23 = vpack.c.bf16 %v4978_v12, %v2427_v18  ;;  %v5383_v21 = vpack.c.bf16 %v4988_v0, %v2515_v62 }
 0x549   :  { %5384 = vmatprep.subr.bf16.mxu1 %v5383_v21  ;;  %v5023_v1 = vpop.f32.mrb[20].mxu0 }
 0x54a   :  { %5386 = vmatpush3.bf16.msra.mxu1 %v5383_v21  ;;  %v2763_v3 = vpop.f32.mrb[21].mxu0 }
 0x54b   :  { %v5399_v31 = vpack.c.bf16 %v5023_v1, %v2763_v3  ;;  %5388 = vmatprep.subr.bf16.mxu1 %v5387_v9 }
 0x54d   :  { %4998 = vmatmul.mubr.msk.f32.vlgmr.msra.gmra.mrb[48].mxu1 %vm563_vm1, %v6075_v41  ;;  %v5026_v8 = vpop.f32.mrb[22].mxu0 }
 0x54e   :  { %5390 = vmatpush3.bf16.msra.mxu1 %v5387_v9  ;;  %v2773_v34 = vpop.f32.mrb[23].mxu0  ;;  %5000 = vmatprep.mubr.msk.f32.mxu1 %vm563_vm1, %v6080_v43 }
 0x54f   :  { %v5403_v25 = vpack.c.bf16 %v5026_v8, %v2773_v34  ;;  %5392 = vmatprep.subr.bf16.mxu1 %v5391_v23 }
 0x551   :  { %5001 = vmatmul.mubr.msk.f32.gmra.mrb[50].mxu1 %vm563_vm1, %v6089_v46  ;;  %v5047_v37 = vpop.f32.mrb[24].mxu0 }
 0x552   :  { %5394 = vmatpush3.bf16.msra.mxu1 %v5391_v23  ;;  %v2940_v39 = vpop.f32.mrb[25].mxu0  ;;  %5011 = vmatprep.mubr.msk.f32.mxu1 %vm563_vm1, %v6094_v48 }
 0x553   :  { %v5411_v26 = vpack.c.bf16 %v5047_v37, %v2940_v39  ;;  %5400 = vmatprep.subr.bf16.mxu1 %v5399_v31 }
 0x555   :  { %5012 = vmatmul.mubr.msk.f32.vlgmr.msra.gmra.mrb[48].mxu1 %vm563_vm1, %v6103_v51  ;;  %v5050_v41 = vpop.f32.mrb[26].mxu0 }
 0x556   :  { %5402 = vmatpush3.bf16.msra.mxu1 %v5399_v31  ;;  %v2950_v16 = vpop.f32.mrb[27].mxu0  ;;  %5014 = vmatprep.mubr.msk.f32.mxu1 %vm563_vm1, %v6108_v53 }
 0x557   :  { %v5415_v43 = vpack.c.bf16 %v5050_v41, %v2950_v16  ;;  %5404 = vmatprep.subr.bf16.mxu1 %v5403_v25 }
 0x559   :  { %5015 = vmatmul.mubr.msk.f32.gmra.mrb[50].mxu1 %vm563_vm1, %v6117_v58  ;;  %v5071_v46 = vpop.f32.mrb[28].mxu0 }
 0x55a   :  { %5406 = vmatpush3.bf16.msra.mxu1 %v5403_v25  ;;  %v3117_v42 = vpop.f32.mrb[29].mxu0  ;;  %5035 = vmatprep.mubr.msk.f32.mxu1 %vm563_vm1, %v6122_v60 }
 0x55b   :  { %v5423_v48 = vpack.c.bf16 %v5071_v46, %v3117_v42  ;;  %5412 = vmatprep.subr.bf16.mxu1 %v5411_v26 }
 0x55d   :  { %5036 = vmatmul.mubr.msk.f32.vlgmr.msra.gmra.mrb[48].mxu1 %vm563_vm1, %v6131_v63  ;;  %v5074_v51 = vpop.f32.mrb[30].mxu0 }
 0x55e   :  { %5414 = vmatpush3.bf16.msra.mxu1 %v5411_v26  ;;  %v3127_v29 = vpop.f32.mrb[31].mxu0  ;;  %5038 = vmatprep.mubr.msk.f32.mxu1 %vm563_vm1, %v6136_v4 }
 0x55f   :  { %v5427_v53 = vpack.c.bf16 %v5074_v51, %v3127_v29  ;;  %5416 = vmatprep.subr.bf16.mxu1 %v5415_v43 }
 0x561   :  { %5039 = vmatmul.mubr.msk.f32.gmra.mrb[50].mxu1 %vm563_vm1, %v6145_v7  ;;  %v5095_v58 = vpop.f32.mrb[32].mxu0 }
 0x562   :  { %5418 = vmatpush3.bf16.msra.mxu1 %v5415_v43  ;;  %v3294_v20 = vpop.f32.mrb[33].mxu0  ;;  %5059 = vmatprep.mubr.msk.f32.mxu1 %vm563_vm1, %v6150_v10 }
 0x563   :  { %v5435_v60 = vpack.c.bf16 %v5095_v58, %v3294_v20  ;;  %5424 = vmatprep.subr.bf16.mxu1 %v5423_v48 }
 0x565   :  { %5060 = vmatmul.mubr.msk.f32.vlgmr.msra.gmra.mrb[48].mxu1 %vm563_vm1, %v6159_v13  ;;  %v5098_v63 = vpop.f32.mrb[34].mxu0 }
 0x566   :  { %5426 = vmatpush3.bf16.msra.mxu1 %v5423_v48  ;;  %v3304_v27 = vpop.f32.mrb[35].mxu0  ;;  %5062 = vmatprep.mubr.msk.f32.mxu1 %vm563_vm1, %v6164_v56 }
 0x567   :  { %v5439_v4 = vpack.c.bf16 %v5098_v63, %v3304_v27  ;;  %5428 = vmatprep.subr.bf16.mxu1 %v5427_v53 }
 0x569   :  { %5063 = vmatmul.mubr.msk.f32.gmra.mrb[50].mxu1 %vm563_vm1, %v6173_v17  ;;  %v5119_v7 = vpop.f32.mrb[36].mxu0 }
 0x56a   :  { %5430 = vmatpush3.bf16.msra.mxu1 %v5427_v53  ;;  %v3471_v6 = vpop.f32.mrb[37].mxu0  ;;  %5083 = vmatprep.mubr.msk.f32.mxu1 %vm563_vm1, %v6178_v19 }
 0x56b   :  { %v5447_v10 = vpack.c.bf16 %v5119_v7, %v3471_v6  ;;  %5436 = vmatprep.subr.bf16.mxu1 %v5435_v60 }
 0x56d   :  { %5084 = vmatmul.mubr.msk.f32.vlgmr.msra.gmra.mrb[48].mxu1 %vm563_vm1, %v6187_v22  ;;  %v5122_v13 = vpop.f32.mrb[38].mxu0 }
 0x56e   :  { %5438 = vmatpush3.bf16.msra.mxu1 %v5435_v60  ;;  %v3481_v44 = vpop.f32.mrb[39].mxu0  ;;  %5086 = vmatprep.mubr.msk.f32.mxu1 %vm563_vm1, %v6192_v24 }
 0x56f   :  { %v5451_v56 = vpack.c.bf16 %v5122_v13, %v3481_v44  ;;  %5440 = vmatprep.subr.bf16.mxu1 %v5439_v4  ;;  %v3933_v13 = vld [vmem:[%s6608_s12] sm:$0x1] }
 0x571   :  { %5087 = vmatmul.mubr.msk.f32.gmra.mrb[50].mxu1 %vm563_vm1, %v6201_v28  ;;  %v5143_v17 = vpop.f32.mrb[40].mxu0 }
 0x572   :  { %5442 = vmatpush3.bf16.msra.mxu1 %v5439_v4  ;;  %v3648_v47 = vpop.f32.mrb[41].mxu0  ;;  %5107 = vmatprep.mubr.msk.f32.mxu1 %vm563_vm1, %v6206_v30 }
 0x573   :  { %v5459_v19 = vpack.c.bf16 %v5143_v17, %v3648_v47  ;;  %5448 = vmatprep.subr.bf16.mxu1 %v5447_v10  ;;  %v4385_v47 = vld [vmem:[%s6609_s13] ss:$0 sm:$0xff] }
 0x575   :  { %5108 = vmatmul.mubr.msk.f32.vlgmr.msra.gmra.mrb[48].mxu1 %vm563_vm1, %v6215_v33  ;;  %v5146_v22 = vpop.f32.mrb[42].mxu0 }
 0x576   :  { %5450 = vmatpush3.bf16.msra.mxu1 %v5447_v10  ;;  %v3658_v50 = vpop.f32.mrb[43].mxu0  ;;  %5110 = vmatprep.mubr.msk.f32.mxu1 %vm563_vm1, %v6220_v35 }
 0x577   :  { %v5463_v24 = vpack.c.bf16 %v5146_v22, %v3658_v50  ;;  %5452 = vmatprep.subr.bf16.mxu1 %v5451_v56 }
 0x579   :  { %5111 = vmatmul.mubr.msk.f32.gmra.mrb[50].mxu1 %vm563_vm1, %v6229_v38  ;;  %v5167_v28 = vpop.f32.mrb[44].mxu0  ;;  %v6632_v38 = vld [vmem:[#allocation5_spill] sm:$0xff] }
 0x57a   :  { %5454 = vmatpush3.bf16.msra.mxu1 %v5451_v56  ;;  %v3825_v52 = vpop.f32.mrb[45].mxu0  ;;  %5131 = vmatprep.mubr.msk.f32.mxu1 %vm563_vm1, %v6234_v40  ;;  %v6633_v40 = vld [vmem:[#allocation6_spill] sm:$0xff] }
 0x57b   :  { %v5471_v30 = vpack.c.bf16 %v5167_v28, %v3825_v52  ;;  %5460 = vmatprep.subr.bf16.mxu1 %v5459_v19 }
 0x57d   :  { %5132 = vmatmul.mubr.msk.f32.vlgmr.msra.gmra.mrb[48].mxu1 %vm563_vm1, %v6243_v45  ;;  %v5170_v33 = vpop.f32.mrb[46].mxu0  ;;  %v6634_v45 = vld [vmem:[#allocation7_spill] sm:$0xff] }
 0x57e   :  { %5462 = vmatpush3.bf16.msra.mxu1 %v5459_v19  ;;  %v3835_v36 = vpop.f32.mrb[47].mxu0  ;;  %5134 = vmatprep.mubr.msk.f32.mxu1 %vm563_vm1, %v6248_v49  ;;  %v6635_v49 = vld [vmem:[#allocation8_spill] sm:$0xff] }
 0x57f   :  { %v5475_v35 = vpack.c.bf16 %v5170_v33, %v3835_v36  ;;  %5464 = vmatprep.subr.bf16.mxu1 %v5463_v24 }
 0x581   :  { %5135 = vmatmul.mubr.msk.f32.gmra.mrb[50].mxu1 %vm563_vm1, %v6257_v54  ;;  %v6636_v54 = vld [vmem:[#allocation9_spill] sm:$0xff] }
 0x582   :  { %5466 = vmatpush3.bf16.msra.mxu1 %v5463_v24  ;;  %5155 = vmatprep.mubr.msk.f32.mxu1 %vm563_vm1, %v6262_v59  ;;  %v6637_v59 = vld [vmem:[#allocation10_spill] sm:$0xff] }
 0x583   :  { %5472 = vmatprep.subr.bf16.mxu1 %v5471_v30 }
 0x585   :  { %5156 = vmatmul.mubr.msk.f32.vlgmr.msra.gmra.mrb[48].mxu1 %vm563_vm1, %v6271_v61  ;;  %v3992_v61 = vld [vmem:[%s6610_s14] sm:$0xff] }
 0x586   :  { %5474 = vmatpush3.bf16.msra.mxu1 %v5471_v30  ;;  %5158 = vmatprep.mubr.msk.f32.mxu1 %vm563_vm1, %v6632_v38  ;;  %v5479_v11 = vpack.c.bf16 %v3993_v32, %v3992_v61 }
 0x587   :  { %5476 = vmatprep.subr.bf16.mxu1 %v5475_v35 }
 0x588   :  { %5480 = vmatprep.subr.bf16.mxu0 %v5479_v11 }
 0x589   :  { %5159 = vmatmul.mubr.msk.f32.gmra.mrb[50].mxu1 %vm563_vm1, %v6633_v40  ;;  %5482 = vmatpush3.bf16.msra.mxu0 %v5479_v11 }
 0x58a   :  { %5478 = vmatpush3.bf16.msra.mxu1 %v5475_v35  ;;  %5179 = vmatprep.mubr.msk.f32.mxu1 %vm563_vm1, %v6634_v45 }
 0x58d   :  { %5180 = vmatmul.mubr.msk.f32.vlgmr.msra.gmra.mrb[48].mxu1 %vm563_vm1, %v6635_v49 }
 0x58e   :  { %5182 = vmatprep.mubr.msk.f32.mxu1 %vm563_vm1, %v6636_v54 }
 0x591   :  { %5183 = vmatmul.mubr.msk.f32.gmra.mrb[50].mxu1 %vm563_vm1, %v6637_v59 }
 0x660   :  { %v5181_v9 = vpop.f32.mrb[48].mxu1 }
 0x661   :  { %v3946_v57 = vmul.f32 %v5181_v9, %v5181_v9  ;;  %v3910_v12 = vpop.f32.mrb[49].mxu1 }
 0x662   :  { %v3935_v0 = vadd.f32 %v5181_v9, %v3910_v12  ;;  %v3945_v18 = vmul.f32 %v3910_v12, %v3910_v12 }
 0x664   :  { %v3949_v62 = vadd.f32 %v3946_v57, %v3945_v18  ;;  %v5184_v23 = vpop.f32.mrb[50].mxu1 }
 0x665   :  { %v3920_v21 = vpop.f32.mrb[51].mxu1  ;;  %v3948_v31 = vmul.f32 %v5184_v23, %v5184_v23 }
 0x666   :  { %v3936_v1 = vadd.f32 %v3935_v0, %v3920_v21  ;;  %v3947_v3 = vmul.f32 %v3920_v21, %v3920_v21 }
 0x668   :  { %v3937_v8 = vadd.f32 %v5184_v23, %v3936_v1  ;;  %v3950_v34 = vadd.f32 %v3949_v62, %v3947_v3 }
 0x66a   :  { %v3938_v25 = vrot.slane %v3937_v8, 4  ;;  %v3951_v37 = vadd.f32 %v3950_v34, %v3948_v31 }
 0x66c   :  { %v3939_v39 = vadd.f32 %v3938_v25, %v3937_v8  ;;  %v3952_v26 = vrot.slane %v3951_v37, 4 }
 0x66e   :  { %v3940_v41 = vrot.slane %v3939_v39, 2  ;;  %v3953_v16 = vadd.f32 %v3952_v26, %v3951_v37 }
 0x670   :  { %v3941_v43 = vadd.f32 %v3940_v41, %v3939_v39  ;;  %v3954_v46 = vrot.slane %v3953_v16, 2 }
 0x672   :  { %v3942_v42 = vrot.slane %v3941_v43, 1  ;;  %v3955_v48 = vadd.f32 %v3954_v46, %v3953_v16 }
 0x674   :  { %v3943_v51 = vadd.f32 %v3942_v42, %v3941_v43  ;;  %v3956_v29 = vrot.slane %v3955_v48, 1 }
 0x676   :  { %v3944_v53 = vmul.f32 0.03125, %v3943_v51  ;;  %v3957_v58 = vadd.f32 %v3956_v29, %v3955_v48 }
 0x678   :  { %v3958_v20 = vmul.f32 0.03125, %v3957_v58  ;;  %v3959_v60 = vmul.f32 %v3944_v53, %v3944_v53  ;;  %v3962_v63 = vsub.f32 %v5181_v9, %v3944_v53  ;;  %v3963_v27 = vsub.f32 %v3920_v21, %v3944_v53 }
 0x679   :  { %v3961_v4 = vsub.f32 %v3910_v12, %v3944_v53  ;;  %v3964_v7 = vsub.f32 %v5184_v23, %v3944_v53 }
 0x67a   :  { %v3960_v6 = vsub.f32 %v3958_v20, %v3959_v60  ;;  %v4091_v60 = vld [vmem:[%s6611_s15] sm:$0x1]  ;;  %s5560_s15 = scalar_lea.vmem %s4160_s7, 512 }
 0x67b   :  { %p5561_p0 = scmp.ne.s32.totalorder %s4160_s7, %s5560_s15  ;;  %p5566_p2 = scmp.lt.s32.totalorder %s5560_s15, %s5560_s15 }
 0x67c   :  { %v3965_v10 = vadd.f32 1e-05, %v3960_v6 }
 0x67d   :  { %p5567_p3 = por %p5566_p2, %p5565_p1 }
 0x67e   :  { %5556 = vrsqrt.f32 %v3965_v10 }
 0x67f   :  { %p5568_p4 = pnand %p5567_p3, %p5561_p0 }
 0x688   :  { %v5557_v44 = vpop.eup %5556 }
 0x689   :  { %v3967_v56 = vmul.f32 %v5557_v44, %v3933_v13 }
 0x68b   :  { %v3972_v17 = vrot.slane %v3967_v56, %v5941_v55 }
 0x68d   :  { %v3975_v19 = vmul.f32 %v3972_v17, %v3962_v63  ;;  %v3976_v22 = vmul.f32 %v3972_v17, %v3963_v27  ;;  %v3974_v50 = vmul.f32 %v3972_v17, %v3961_v4  ;;  %v3977_v24 = vmul.f32 %v3972_v17, %v3964_v7  ;;  %v4390_v7 = vld [vmem:[%s6612_s16] ss:$0 sm:$0xff] }
 0x68f   :  { %v3985_v28 = vadd.f32 %v4385_v47, %v3975_v19  ;;  %v3986_v52 = vadd.f32 %v4385_v47, %v3976_v22  ;;  %v3984_v30 = vadd.f32 %v4385_v47, %v3974_v50  ;;  %v3987_v35 = vadd.f32 %v4385_v47, %v3977_v24 }
 0x691   :  { %v3989_v33 = vmax.f32 %v3985_v28, 0.0  ;;  %v3988_v36 = vmax.f32 %v3984_v30, 0.0  ;;  %v3990_v38 = vmax.f32 %v3986_v52, 0.0  ;;  %v3991_v40 = vmax.f32 %v3987_v35, 0.0 }
 0x693   :  { %5189 = vmatprep.mubr.msk.f32.mxu0 %vm368_vm0, %v3988_v36 }
 0x694   :  { %5190 = vmatmul.mubr.msk.f32.vlgmr.msra.gmra.mrb[48].mxu0 %vm368_vm0, %v3989_v33 }
 0x695   :  { %5192 = vmatprep.mubr.msk.f32.mxu0 %vm368_vm0, %v3990_v38 }
 0x698   :  { %5193 = vmatmul.mubr.msk.f32.gmra.mrb[50].mxu0 %vm368_vm0, %v3991_v40 }
 0x767   :  { %v5191_v45 = vpop.f32.mrb[48].mxu0 }
 0x768   :  { %v4104_v49 = vmul.f32 %v5191_v45, %v5191_v45  ;;  %v4072_v54 = vpop.f32.mrb[49].mxu0 }
 0x769   :  { %v4093_v59 = vadd.f32 %v5191_v45, %v4072_v54  ;;  %v4103_v61 = vmul.f32 %v4072_v54, %v4072_v54 }
 0x76b   :  { %v4107_v32 = vadd.f32 %v4104_v49, %v4103_v61  ;;  %v5194_v11 = vpop.f32.mrb[50].mxu0 }
 0x76c   :  { %v4082_v9 = vpop.f32.mrb[51].mxu0  ;;  %v4106_v0 = vmul.f32 %v5194_v11, %v5194_v11 }
 0x76d   :  { %v4094_v57 = vadd.f32 %v4093_v59, %v4082_v9  ;;  %v4105_v12 = vmul.f32 %v4082_v9, %v4082_v9 }
 0x76f   :  { %v4095_v18 = vadd.f32 %v5194_v11, %v4094_v57  ;;  %v4108_v62 = vadd.f32 %v4107_v32, %v4105_v12 }
 0x771   :  { %v4096_v23 = vrot.slane %v4095_v18, 4  ;;  %v4109_v21 = vadd.f32 %v4108_v62, %v4106_v0 }
 0x773   :  { %v4097_v1 = vadd.f32 %v4096_v23, %v4095_v18  ;;  %v4110_v3 = vrot.slane %v4109_v21, 4 }
 0x775   :  { %v4098_v31 = vrot.slane %v4097_v1, 2  ;;  %v4111_v8 = vadd.f32 %v4110_v3, %v4109_v21 }
 0x777   :  { %v4099_v34 = vadd.f32 %v4098_v31, %v4097_v1  ;;  %v4112_v25 = vrot.slane %v4111_v8, 2 }
 0x779   :  { %v4100_v37 = vrot.slane %v4099_v34, 1  ;;  %v4113_v39 = vadd.f32 %v4112_v25, %v4111_v8 }
 0x77b   :  { %v4101_v26 = vadd.f32 %v4100_v37, %v4099_v34  ;;  %v4114_v41 = vrot.slane %v4113_v39, 1 }
 0x77d   :  { %v4102_v16 = vmul.f32 0.03125, %v4101_v26  ;;  %v4115_v43 = vadd.f32 %v4114_v41, %v4113_v39 }
 0x77f   :  { %v4116_v46 = vmul.f32 0.03125, %v4115_v43  ;;  %v4117_v42 = vmul.f32 %v4102_v16, %v4102_v16  ;;  %v4119_v48 = vsub.f32 %v4072_v54, %v4102_v16  ;;  %v4120_v51 = vsub.f32 %v5191_v45, %v4102_v16 }
 0x780   :  { %v4121_v29 = vsub.f32 %v4082_v9, %v4102_v16  ;;  %v4122_v53 = vsub.f32 %v5194_v11, %v4102_v16 }
 0x781   :  { %v4118_v58 = vsub.f32 %v4116_v46, %v4117_v42 }
 0x783   :  { %v4123_v20 = vadd.f32 1e-05, %v4118_v58 }
 0x785   :  { %5558 = vrsqrt.f32 %v4123_v20 }
 0x78f   :  { %v5559_v63 = vpop.eup %5558 }
 0x790   :  { %v4125_v27 = vmul.f32 %v5559_v63, %v4091_v60 }
 0x792   :  { %v4130_v4 = vrot.slane %v4125_v27, %v5941_v55 }
 0x794   :  { %v4132_v6 = vmul.f32 %v4130_v4, %v4119_v48  ;;  %v4133_v10 = vmul.f32 %v4130_v4, %v4120_v51  ;;  %v4134_v13 = vmul.f32 %v4130_v4, %v4121_v29  ;;  %v4135_v44 = vmul.f32 %v4130_v4, %v4122_v53 }
 0x796   :  { %v4142_v56 = vadd.f32 %v4390_v7, %v4132_v6  ;;  %v4143_v17 = vadd.f32 %v4390_v7, %v4133_v10  ;;  %v4144_v47 = vadd.f32 %v4390_v7, %v4134_v13  ;;  %v4145_v19 = vadd.f32 %v4390_v7, %v4135_v44 }
 0x798   :  { %v4146_v22 = vadd.f32 %v4142_v56, %v6363_v5  ;;  %v4147_v50 = vadd.f32 %v4143_v17, %v6366_v14  ;;  %v4148_v55 = vadd.f32 %v4144_v47, %v6369_v15  ;;  %v4149_v24 = vadd.f32 %v4145_v19, %v6384_v2 }
 0x79a   :  { %4152 = vst [vmem:[#allocation2 + $0x10] sm:$0xff] %v4148_v55  ;;  %4150 = vst [vmem:[#allocation2] sm:$0xff] %v4146_v22 }
 0x79b   :  { %4151 = vst [vmem:[#allocation2 + $0x8] sm:$0xff] %v4147_v50  ;;  %4153 = vst [vmem:[#allocation2 + $0x18] sm:$0xff] %v4149_v24 }
 0x79c   :  { %5571 = shalt.err (!%p5568_p4)
}
 0x79d   :  { %s5572_s0 = scalar_lea.hbm %s6613_s17, 512 }
 0x79e   :  { %p5573_p5 = scmp.ne.s32.totalorder %s6613_s17, %s5572_s0  ;;  %p5576_p6 = scmp.lt.u32.totalorder %s5572_s0, %s6613_s17 }
 0x7a0   :  { %p5578_p7 = pnand %p5576_p6, %p5573_p5 }
 0x7a2   :  { %5581 = shalt.err (!%p5578_p7)
}
 0x7a3   :  { %s5585_s1 = smov 128   ;;  %s5586_s20 = smov 8  }
 0x7a4   :  { %4165 = dma.vmem_to_hbm [thread:$0]  %s4160_s7, 512, %s6613_s17, [#allocation3], %s5585_s1, %s5585_s1, %s5586_s20  }
 0x7a5   :  { %5582 = dma.done.wait [#allocation3], 512  }
 0x7a6   :  { %5583 = vsyncadd [#allocation3], 4294966784 }
 0x7a7   :  { %4169 = vsyncpa [#allocation3], 1 }

</bundles_post_ra>
